<compile_context>
chip_gen: v7x
topology: tpu7x:2x2x1
jax: 0.10.0
libtpu: 0.0.40
codegen_flags: <defaults>
</compile_context>

<pallas_src>
import functools

import jax
import jax.numpy as jnp
from jax.experimental import pallas as pl
from jax.experimental.pallas import tpu as pltpu

TARGET_SIGMA = 0.1

# Padded hidden widths (multiples of 128 so every matmul tile is lane-dense).
_H1, _H2, _H3 = 512, 384, 128   # 500 -> 512, 300 -> 384, 100 -> 128
_WCOL = 512                     # packed-parameter buffer lane width
_OUT_LANES = 128                # lane-dense output block width


def _round8(x):
    return (x + 7) // 8 * 8


# ----------------------------------------------------------------------------- kernel
def _scinet_kernel(latent_dim, output_dim, layout,
                   obs_ref, aux_ref, p_ref, out_ref):
    obs = obs_ref[...]                              # [TB, input_dim]
    aux = aux_ref[...]                              # [TB, 1 + latent_dim]
    q = aux[:, 0:1]                                 # [TB, 1]
    eps = aux[:, 1:1 + latent_dim]                  # [TB, latent_dim]

    def linear(h, name, out_w):
        r0, k = layout[name]                        # static python ints
        w = p_ref[r0:r0 + k, :out_w]                # [k, out_w]
        b = p_ref[r0 + k:r0 + k + 1, :out_w]        # [1, out_w] (bias row)
        return jnp.dot(h, w, preferred_element_type=jnp.float32) + b

    # ----- encoder -----
    z = jnp.maximum(linear(obs, "enc1", _H1), 0.0)  # [TB, 512]
    z = jnp.maximum(linear(z, "enc2", _H2), 0.0)    # [TB, 384]
    z = jnp.maximum(linear(z, "enc3", _H3), 0.0)    # [TB, 128]
    mu = linear(z, "mu", latent_dim)                # [TB, latent_dim]
    log_sigma = linear(z, "sig", latent_dim)        # [TB, latent_dim]
    z_sample = mu + log_sigma * eps                 # reparameterisation (torch quirk kept)

    # ----- per-sample KL term (mean over latent dim) -----
    ts = jnp.float32(TARGET_SIGMA)
    inner = (mu * mu) / (ts * ts) \
        + jnp.exp(2.0 * log_sigma) / (ts * ts) \
        - 2.0 * log_sigma + 2.0 * jnp.log(ts)
    kl_per_sample = jnp.mean(inner, axis=1, keepdims=True)          # [TB, 1]

    # ----- decoder -----
    r0, k = layout["dec1"]
    qw = p_ref[r0:r0 + 1, :_H3]                     # [1, 128]  q weight row
    wz = p_ref[r0 + 1:r0 + 1 + latent_dim, :_H3]    # [latent_dim, 128]
    bd1 = p_ref[r0 + k:r0 + k + 1, :_H3]            # [1, 128]
    # K=1 matmul replaced by a broadcasted VPU multiply.
    h = q * qw + jnp.dot(z_sample, wz, preferred_element_type=jnp.float32) + bd1
    h = jnp.maximum(h, 0.0)                         # [TB, 128]
    h = jnp.maximum(linear(h, "dec2", _H3), 0.0)    # [TB, 128]
    y = linear(h, "out", _OUT_LANES)                # [TB, 128]; cols >= output_dim are 0

    # Fold the per-sample KL into lane `output_dim` of the lane-dense output block.
    lane = jax.lax.broadcasted_iota(jnp.int32, y.shape, 1)
    out_ref[...] = y + jnp.where(lane == output_dim, kl_per_sample, 0.0)


# ------------------------------------------------------------------- parameter packing
def pack_params(params, input_dim, latent_dim, output_dim):
    """Pack all weights/biases into one [TOTAL_ROWS, 512] f32 buffer.

    Each layer occupies an 8-row-aligned block: rows [0:k_real] hold W (transposed,
    [in, out]), row k_pad holds the bias, unused rows/cols are zero.  Returns the
    packed array and a static {name: (row_start, k_pad)} layout.
    """
    entries = [
        ("enc1", input_dim, params["enc1_w"], params["enc1_b"]),
        ("enc2", _H1, params["enc2_w"], params["enc2_b"]),
        ("enc3", _H2, params["enc3_w"], params["enc3_b"]),
        ("mu",   _H3, params["latent_w"][:, :latent_dim],
                 params["latent_b"][..., :latent_dim]),
        ("sig",  _H3, params["latent_w"][:, latent_dim:],
                 params["latent_b"][..., latent_dim:]),
        ("dec1", 1 + latent_dim, params["dec1_w"], params["dec1_b"]),
        ("dec2", _H3, params["dec2_w"], params["dec2_b"]),
        ("out",  _H3, params["out_w"], params["out_b"]),
    ]
    blocks, layout, row = [], {}, 0
    for name, k_pad, w, b in entries:
        w = jnp.asarray(w, jnp.float32)
        b = jnp.reshape(jnp.asarray(b, jnp.float32), (-1,))
        k_real, n_real = w.shape
        blk_rows = _round8(k_pad + 1)
        blk = jnp.zeros((blk_rows, _WCOL), jnp.float32)
        blk = blk.at[:k_real, :n_real].set(w)
        blk = blk.at[k_pad, :n_real].set(b)
        layout[name] = (row, k_pad)
        blocks.append(blk)
        row += blk_rows
    return jnp.concatenate(blocks, axis=0), layout


# ---------------------------------------------------------------------------- wrapper
def scinet_forward(obs, eps, params, *, input_dim, latent_dim, output_dim,
                   batch_tile=256):
    """obs: [B, input_dim + 1] f32 (last col is q), eps: [B, latent_dim] f32.

    Returns (decoder_output [B, output_dim], kl_loss scalar).
    """
    assert output_dim < _OUT_LANES, "output_dim must be < 128 for the fused KL lane"
    B = obs.shape[0]

    # Split obs / q in XLA (free) rather than in-kernel, and pack q with eps so the
    # kernel has only 3 input operands (obs features, aux, packed params).
    obs_feat = obs[:, :input_dim]
    q = obs[:, input_dim:input_dim + 1]
    aux = jnp.concatenate([q, eps], axis=1)              # [B, 1 + latent_dim]

    packed, layout = pack_params(params, input_dim, latent_dim, output_dim)

    # Batch tiling: multiple of 8 (f32 sublane), up to `batch_tile` rows per step.
    TB = min(batch_tile, _round8(B))
    num_tiles = pl.cdiv(B, TB)
    B_pad = num_tiles * TB
    if B_pad != B:
        pad = ((0, B_pad - B), (0, 0))
        obs_feat = jnp.pad(obs_feat, pad)
        aux = jnp.pad(aux, pad)

    kernel = functools.partial(_scinet_kernel, latent_dim, output_dim, layout)

    flops_per_row = 2 * (input_dim * _H1 + _H1 * _H2 + _H2 * _H3
                         + 2 * _H3 * latent_dim + latent_dim * _H3
                         + _H3 * _H3 + _H3 * _OUT_LANES)
    cost = pl.CostEstimate(
        flops=flops_per_row * B_pad,
        transcendentals=latent_dim * B_pad,
        bytes_accessed=int(4 * (packed.size + obs_feat.size + aux.size
                                + B_pad * _OUT_LANES)),
    )

    res = pl.pallas_call(
        kernel,
        out_shape=jax.ShapeDtypeStruct((B_pad, _OUT_LANES), jnp.float32),
        grid=(num_tiles,),
        in_specs=[
            pl.BlockSpec((TB, input_dim), lambda i: (i, 0)),          # obs features
            pl.BlockSpec((TB, 1 + latent_dim), lambda i: (i, 0)),     # [q, eps]
            pl.BlockSpec(packed.shape, lambda i: (0, 0)),             # params (resident)
        ],
        out_specs=pl.BlockSpec((TB, _OUT_LANES), lambda i: (i, 0)),
        compiler_params=pltpu.CompilerParams(
            dimension_semantics=("parallel",)),
        cost_estimate=cost,
    )(obs_feat, aux, packed)

    out = res[:B, :output_dim]
    kl_per_sample = res[:B, output_dim]
    kl = 0.5 * (jnp.mean(kl_per_sample) - jnp.float32(latent_dim))
    return out, kl


# ---------------------------------------------------------------- params / reference
def init_params(key, input_dim, latent_dim, output_dim):
    """Deterministic synthetic params, PyTorch-Linear-style U(-1/sqrt(fan_in), ...)."""
    layer_defs = [
        ("enc1", input_dim, 500),
        ("enc2", 500, 300),
        ("enc3", 300, 100),
        ("latent", 100, 2 * latent_dim),
        ("dec1", latent_dim + 1, 100),
        ("dec2", 100, 100),
        ("out", 100, output_dim),
    ]
    params = {}
    for name, fan_in, fan_out in layer_defs:
        key, kw, kb = jax.random.split(key, 3)
        bound = 1.0 / float(fan_in) ** 0.5
        params[name + "_w"] = jax.random.uniform(
            kw, (fan_in, fan_out), jnp.float32, -bound, bound)
        params[name + "_b"] = jax.random.uniform(
            kb, (1, fan_out), jnp.float32, -bound, bound)
    return params


def _scinet_ref(obs, eps, params, *, input_dim, latent_dim):
    """Pure-JAX reference mirroring the PyTorch forward exactly."""
    hp = jax.lax.Precision.HIGHEST
    x = obs[:, :input_dim]
    q = obs[:, input_dim:input_dim + 1]

    def lin(h, n):
        return jnp.dot(h, params[n + "_w"], precision=hp) + params[n + "_b"]

    z = jax.nn.relu(lin(x, "enc1"))
    z = jax.nn.relu(lin(z, "enc2"))
    z = jax.nn.relu(lin(z, "enc3"))
    z = lin(z, "latent")
    mu, log_sigma = z[:, :latent_dim], z[:, latent_dim:]
    z_sample = mu + log_sigma * eps
    ts = TARGET_SIGMA
    inner = mu ** 2 / ts ** 2 + jnp.exp(2.0 * log_sigma) / ts ** 2 \
        - 2.0 * log_sigma + 2.0 * jnp.log(ts)
    kl = 0.5 * (jnp.mean(jnp.mean(inner, axis=1)) - latent_dim)
    d = jnp.concatenate([q, z_sample], axis=1)
    h = jax.nn.relu(lin(d, "dec1"))
    h = jax.nn.relu(lin(h, "dec2"))
    return lin(h, "out"), kl


if __name__ == "__main__":
    INPUT_DIM, LATENT_DIM, OUTPUT_DIM = 16, 3, 1
    BATCH = 2

    key = jax.random.PRNGKey(0)
    kp, kx, ke = jax.random.split(key, 3)

    params = init_params(kp, INPUT_DIM, LATENT_DIM, OUTPUT_DIM)
    # obs carries [input features..., q] like the torch forward expects.
    obs = jax.random.normal(kx, (BATCH, INPUT_DIM + 1), dtype=jnp.float32)
    # eps replaces torch.randn(x.size(0), latent_dim) — passed in for determinism.
    eps = jax.random.normal(ke, (BATCH, LATENT_DIM), dtype=jnp.float32)

    out, kl = scinet_forward(obs, eps, params,
                             input_dim=INPUT_DIM,
                             latent_dim=LATENT_DIM,
                             output_dim=OUTPUT_DIM)
    jax.block_until_ready((out, kl))

    ref_out, ref_kl = _scinet_ref(obs, eps, params,
                                  input_dim=INPUT_DIM, latent_dim=LATENT_DIM)
    assert out.shape == (BATCH, OUTPUT_DIM)
    assert kl.shape == ()
    assert bool(jnp.allclose(out, ref_out, atol=5e-3, rtol=5e-3))
    assert bool(jnp.allclose(kl, ref_kl, atol=5e-3, rtol=5e-3))
    print("KERNEL_OK")
</pallas_src>

<mosaic_0001>
module attributes {stable_mosaic.version = 11 : i64} {
  func.func @_scinet_kernel(%arg0: i32, %arg1: memref<8x16xf32, #tpu.memory_space<vmem>>, %arg2: memref<8x4xf32, #tpu.memory_space<vmem>>, %arg3: memref<1488x512xf32, #tpu.memory_space<vmem>>, %arg4: memref<8x128xf32, #tpu.memory_space<vmem>>) attributes {dimension_semantics = [#tpu.dimension_semantics<parallel>], iteration_bounds = array<i64: 1>, scalar_prefetch = 0 : i64, scratch_operands = 0 : i64, tpu.core_type = #tpu.core_type<tc>, window_params = [{transform_indices = @transform_0, window_bounds = array<i64: 8, 16>}, {transform_indices = @transform_1, window_bounds = array<i64: 8, 4>}, {pipeline_mode = #tpu.pipeline_mode<synchronous>, transform_indices = @transform_2, window_bounds = array<i64: 1488, 512>}, {transform_indices = @transform_3, window_bounds = array<i64: 8, 128>}]} {
    %c0 = arith.constant 0 : index
    %c0_0 = arith.constant 0 : index
    %0 = vector.load %arg1[%c0, %c0_0] : memref<8x16xf32, #tpu.memory_space<vmem>>, vector<8x16xf32>
    %c0_1 = arith.constant 0 : index
    %c0_2 = arith.constant 0 : index
    %1 = vector.load %arg2[%c0_1, %c0_2] : memref<8x4xf32, #tpu.memory_space<vmem>>, vector<8x4xf32>
    %2 = vector.extract_strided_slice %1 {offsets = [0, 0], sizes = [8, 1], strides = [1, 1]} : vector<8x4xf32> to vector<8x1xf32>
    %3 = vector.extract_strided_slice %1 {offsets = [0, 1], sizes = [8, 3], strides = [1, 1]} : vector<8x4xf32> to vector<8x3xf32>
    %c0_3 = arith.constant 0 : index
    %c0_4 = arith.constant 0 : index
    %4 = vector.load %arg3[%c0_3, %c0_4] : memref<1488x512xf32, #tpu.memory_space<vmem>>, vector<16x512xf32>
    %c16 = arith.constant 16 : index
    %c0_5 = arith.constant 0 : index
    %5 = vector.load %arg3[%c16, %c0_5] : memref<1488x512xf32, #tpu.memory_space<vmem>>, vector<1x512xf32>
    %cst = arith.constant dense<0.000000e+00> : vector<8x512xf32>
    %6 = tpu.matmul %0, %4, %cst {dimension_numbers = #tpu.dot_dimension_numbers<[1], [0], [0], [1], [0, 0, 1, 1], [], []>} : vector<8x16xf32>, vector<16x512xf32>, vector<8x512xf32> -> vector<8x512xf32>
    %7 = vector.broadcast %5 : vector<1x512xf32> to vector<8x512xf32>
    %8 = arith.addf %6, %7 : vector<8x512xf32>
    %cst_6 = arith.constant 0.000000e+00 : f32
    %9 = vector.broadcast %cst_6 : f32 to vector<8x512xf32>
    %10 = arith.maximumf %8, %9 : vector<8x512xf32>
    %c24 = arith.constant 24 : index
    %c0_7 = arith.constant 0 : index
    %11 = vector.load %arg3[%c24, %c0_7] : memref<1488x512xf32, #tpu.memory_space<vmem>>, vector<512x384xf32>
    %c536 = arith.constant 536 : index
    %c0_8 = arith.constant 0 : index
    %12 = vector.load %arg3[%c536, %c0_8] : memref<1488x512xf32, #tpu.memory_space<vmem>>, vector<1x384xf32>
    %cst_9 = arith.constant dense<0.000000e+00> : vector<8x384xf32>
    %13 = tpu.matmul %10, %11, %cst_9 {dimension_numbers = #tpu.dot_dimension_numbers<[1], [0], [0], [1], [0, 0, 1, 1], [], []>} : vector<8x512xf32>, vector<512x384xf32>, vector<8x384xf32> -> vector<8x384xf32>
    %14 = vector.broadcast %12 : vector<1x384xf32> to vector<8x384xf32>
    %15 = arith.addf %13, %14 : vector<8x384xf32>
    %cst_10 = arith.constant 0.000000e+00 : f32
    %16 = vector.broadcast %cst_10 : f32 to vector<8x384xf32>
    %17 = arith.maximumf %15, %16 : vector<8x384xf32>
    %c544 = arith.constant 544 : index
    %c0_11 = arith.constant 0 : index
    %18 = vector.load %arg3[%c544, %c0_11] : memref<1488x512xf32, #tpu.memory_space<vmem>>, vector<384x128xf32>
    %c928 = arith.constant 928 : index
    %c0_12 = arith.constant 0 : index
    %19 = vector.load %arg3[%c928, %c0_12] : memref<1488x512xf32, #tpu.memory_space<vmem>>, vector<1x128xf32>
    %cst_13 = arith.constant dense<0.000000e+00> : vector<8x128xf32>
    %20 = tpu.matmul %17, %18, %cst_13 {dimension_numbers = #tpu.dot_dimension_numbers<[1], [0], [0], [1], [0, 0, 1, 1], [], []>} : vector<8x384xf32>, vector<384x128xf32>, vector<8x128xf32> -> vector<8x128xf32>
    %21 = vector.broadcast %19 : vector<1x128xf32> to vector<8x128xf32>
    %22 = arith.addf %20, %21 : vector<8x128xf32>
    %cst_14 = arith.constant 0.000000e+00 : f32
    %23 = vector.broadcast %cst_14 : f32 to vector<8x128xf32>
    %24 = arith.maximumf %22, %23 : vector<8x128xf32>
    %c936 = arith.constant 936 : index
    %c0_15 = arith.constant 0 : index
    %25 = vector.load %arg3[%c936, %c0_15] : memref<1488x512xf32, #tpu.memory_space<vmem>>, vector<128x3xf32>
    %c1064 = arith.constant 1064 : index
    %c0_16 = arith.constant 0 : index
    %26 = vector.load %arg3[%c1064, %c0_16] : memref<1488x512xf32, #tpu.memory_space<vmem>>, vector<1x3xf32>
    %cst_17 = arith.constant dense<0.000000e+00> : vector<8x3xf32>
    %27 = tpu.matmul %24, %25, %cst_17 {dimension_numbers = #tpu.dot_dimension_numbers<[1], [0], [0], [1], [0, 0, 1, 1], [], []>} : vector<8x128xf32>, vector<128x3xf32>, vector<8x3xf32> -> vector<8x3xf32>
    %28 = vector.broadcast %26 : vector<1x3xf32> to vector<8x3xf32>
    %29 = arith.addf %27, %28 : vector<8x3xf32>
    %c1072 = arith.constant 1072 : index
    %c0_18 = arith.constant 0 : index
    %30 = vector.load %arg3[%c1072, %c0_18] : memref<1488x512xf32, #tpu.memory_space<vmem>>, vector<128x3xf32>
    %c1200 = arith.constant 1200 : index
    %c0_19 = arith.constant 0 : index
    %31 = vector.load %arg3[%c1200, %c0_19] : memref<1488x512xf32, #tpu.memory_space<vmem>>, vector<1x3xf32>
    %cst_20 = arith.constant dense<0.000000e+00> : vector<8x3xf32>
    %32 = tpu.matmul %24, %30, %cst_20 {dimension_numbers = #tpu.dot_dimension_numbers<[1], [0], [0], [1], [0, 0, 1, 1], [], []>} : vector<8x128xf32>, vector<128x3xf32>, vector<8x3xf32> -> vector<8x3xf32>
    %33 = vector.broadcast %31 : vector<1x3xf32> to vector<8x3xf32>
    %34 = arith.addf %32, %33 : vector<8x3xf32>
    %35 = arith.mulf %34, %3 : vector<8x3xf32>
    %36 = arith.addf %29, %35 : vector<8x3xf32>
    %37 = arith.mulf %29, %29 : vector<8x3xf32>
    %cst_21 = arith.constant 1.000000e-01 : f32
    %cst_22 = arith.constant 1.000000e-01 : f32
    %38 = arith.mulf %cst_21, %cst_22 : f32
    %39 = vector.broadcast %38 : f32 to vector<8x3xf32>
    %40 = arith.divf %37, %39 : vector<8x3xf32>
    %cst_23 = arith.constant 2.000000e+00 : f32
    %41 = vector.broadcast %cst_23 : f32 to vector<8x3xf32>
    %42 = arith.mulf %41, %34 : vector<8x3xf32>
    %43 = math.exp %42 : vector<8x3xf32>
    %cst_24 = arith.constant 1.000000e-01 : f32
    %cst_25 = arith.constant 1.000000e-01 : f32
    %44 = arith.mulf %cst_24, %cst_25 : f32
    %45 = vector.broadcast %44 : f32 to vector<8x3xf32>
    %46 = arith.divf %43, %45 : vector<8x3xf32>
    %47 = arith.addf %40, %46 : vector<8x3xf32>
    %cst_26 = arith.constant 2.000000e+00 : f32
    %48 = vector.broadcast %cst_26 : f32 to vector<8x3xf32>
    %49 = arith.mulf %48, %34 : vector<8x3xf32>
    %50 = arith.subf %47, %49 : vector<8x3xf32>
    %cst_27 = arith.constant 1.000000e-01 : f32
    %51 = math.log %cst_27 : f32
    %cst_28 = arith.constant 2.000000e+00 : f32
    %52 = arith.mulf %cst_28, %51 : f32
    %53 = vector.broadcast %52 : f32 to vector<8x3xf32>
    %54 = arith.addf %50, %53 : vector<8x3xf32>
    %cst_29 = arith.constant dense<0.000000e+00> : vector<8xf32>
    %55 = vector.multi_reduction <add>, %54, %cst_29 [1] : vector<8x3xf32> to vector<8xf32>
    %56 = vector.shape_cast %55 : vector<8xf32> to vector<8x1xf32>
    %cst_30 = arith.constant 3.000000e+00 : f32
    %57 = vector.broadcast %cst_30 : f32 to vector<8x1xf32>
    %58 = arith.divf %56, %57 : vector<8x1xf32>
    %c1208 = arith.constant 1208 : index
    %c0_31 = arith.constant 0 : index
    %59 = vector.load %arg3[%c1208, %c0_31] : memref<1488x512xf32, #tpu.memory_space<vmem>>, vector<1x128xf32>
    %c1209 = arith.constant 1209 : index
    %c0_32 = arith.constant 0 : index
    %60 = vector.load %arg3[%c1209, %c0_32] : memref<1488x512xf32, #tpu.memory_space<vmem>>, vector<3x128xf32>
    %c1212 = arith.constant 1212 : index
    %c0_33 = arith.constant 0 : index
    %61 = vector.load %arg3[%c1212, %c0_33] : memref<1488x512xf32, #tpu.memory_space<vmem>>, vector<1x128xf32>
    %62 = vector.broadcast %2 : vector<8x1xf32> to vector<8x128xf32>
    %63 = vector.broadcast %59 : vector<1x128xf32> to vector<8x128xf32>
    %64 = arith.mulf %62, %63 : vector<8x128xf32>
    %cst_34 = arith.constant dense<0.000000e+00> : vector<8x128xf32>
    %65 = tpu.matmul %36, %60, %cst_34 {dimension_numbers = #tpu.dot_dimension_numbers<[1], [0], [0], [1], [0, 0, 1, 1], [], []>} : vector<8x3xf32>, vector<3x128xf32>, vector<8x128xf32> -> vector<8x128xf32>
    %66 = arith.addf %64, %65 : vector<8x128xf32>
    %67 = vector.broadcast %61 : vector<1x128xf32> to vector<8x128xf32>
    %68 = arith.addf %66, %67 : vector<8x128xf32>
    %cst_35 = arith.constant 0.000000e+00 : f32
    %69 = vector.broadcast %cst_35 : f32 to vector<8x128xf32>
    %70 = arith.maximumf %68, %69 : vector<8x128xf32>
    %c1216 = arith.constant 1216 : index
    %c0_36 = arith.constant 0 : index
    %71 = vector.load %arg3[%c1216, %c0_36] : memref<1488x512xf32, #tpu.memory_space<vmem>>, vector<128x128xf32>
    %c1344 = arith.constant 1344 : index
    %c0_37 = arith.constant 0 : index
    %72 = vector.load %arg3[%c1344, %c0_37] : memref<1488x512xf32, #tpu.memory_space<vmem>>, vector<1x128xf32>
    %cst_38 = arith.constant dense<0.000000e+00> : vector<8x128xf32>
    %73 = tpu.matmul %70, %71, %cst_38 {dimension_numbers = #tpu.dot_dimension_numbers<[1], [0], [0], [1], [0, 0, 1, 1], [], []>} : vector<8x128xf32>, vector<128x128xf32>, vector<8x128xf32> -> vector<8x128xf32>
    %74 = vector.broadcast %72 : vector<1x128xf32> to vector<8x128xf32>
    %75 = arith.addf %73, %74 : vector<8x128xf32>
    %cst_39 = arith.constant 0.000000e+00 : f32
    %76 = vector.broadcast %cst_39 : f32 to vector<8x128xf32>
    %77 = arith.maximumf %75, %76 : vector<8x128xf32>
    %c1352 = arith.constant 1352 : index
    %c0_40 = arith.constant 0 : index
    %78 = vector.load %arg3[%c1352, %c0_40] : memref<1488x512xf32, #tpu.memory_space<vmem>>, vector<128x128xf32>
    %c1480 = arith.constant 1480 : index
    %c0_41 = arith.constant 0 : index
    %79 = vector.load %arg3[%c1480, %c0_41] : memref<1488x512xf32, #tpu.memory_space<vmem>>, vector<1x128xf32>
    %cst_42 = arith.constant dense<0.000000e+00> : vector<8x128xf32>
    %80 = tpu.matmul %77, %78, %cst_42 {dimension_numbers = #tpu.dot_dimension_numbers<[1], [0], [0], [1], [0, 0, 1, 1], [], []>} : vector<8x128xf32>, vector<128x128xf32>, vector<8x128xf32> -> vector<8x128xf32>
    %81 = vector.broadcast %79 : vector<1x128xf32> to vector<8x128xf32>
    %82 = arith.addf %80, %81 : vector<8x128xf32>
    %83 = tpu.iota {dimensions = array<i32: 1>} : vector<8x128xi32>
    %c1_i32 = arith.constant 1 : i32
    %84 = vector.broadcast %c1_i32 : i32 to vector<8x128xi32>
    %85 = arith.cmpi eq, %83, %84 : vector<8x128xi32>
    %cst_43 = arith.constant 0.000000e+00 : f32
    %86 = vector.shape_cast %58 : vector<8x1xf32> to vector<8x1xf32>
    %87 = vector.broadcast %86 : vector<8x1xf32> to vector<8x128xf32>
    %88 = vector.broadcast %cst_43 : f32 to vector<8x128xf32>
    %89 = arith.select %85, %87, %88 : vector<8x128xi1>, vector<8x128xf32>
    %90 = arith.addf %82, %89 : vector<8x128xf32>
    %c0_44 = arith.constant 0 : index
    %c0_45 = arith.constant 0 : index
    %91 = vector.load %arg4[%c0_44, %c0_45] : memref<8x128xf32, #tpu.memory_space<vmem>>, vector<8x128xf32>
    tpu.vector_store %arg4[%c0_44, %c0_45], %90 {strides = array<i32>} : memref<8x128xf32, #tpu.memory_space<vmem>>, vector<8x128xf32>,
    return
  }
  func.func @transform_0(%arg0: i32) -> (i32, i32) {
    %c0_i32 = arith.constant 0 : i32
    %c0_i32_0 = arith.constant 0 : i32
    return %arg0, %c0_i32 : i32, i32
  }
  func.func @transform_1(%arg0: i32) -> (i32, i32) {
    %c0_i32 = arith.constant 0 : i32
    %c0_i32_0 = arith.constant 0 : i32
    return %arg0, %c0_i32 : i32, i32
  }
  func.func @transform_2(%arg0: i32) -> (i32, i32) {
    %c0_i32 = arith.constant 0 : i32
    %c0_i32_0 = arith.constant 0 : i32
    %c0_i32_1 = arith.constant 0 : i32
    return %c0_i32, %c0_i32_0 : i32, i32
  }
  func.func @transform_3(%arg0: i32) -> (i32, i32) {
    %c0_i32 = arith.constant 0 : i32
    %c0_i32_0 = arith.constant 0 : i32
    return %arg0, %c0_i32 : i32, i32
  }
}

</mosaic_0001>

<bundles_post_ra>
// kernel: tpu_custom_call.1
= control target key start
LH: loop header
LB: loop body
LE: loop exit
PB: predicated region body
PF: predicated region fallthrough
CT: control target
= control target key end

     0   :  { %8 = vsyncpa [#allocation3], 0  ;;  %s2373_s0 = inlined_call_operand.hbm [shape: f32[8,16], index: 0, kind: input, shape index: {}]   ;;  %s2374_s1 = inlined_call_operand.vmem [shape: f32[8,4], index: 1, kind: input, shape index: {}]   ;;  %s2375_s2 = inlined_call_operand.hbm [shape: f32[1488,512], index: 2, kind: input, shape index: {}]   ;;  %s2376_s3 = inlined_call_operand.hbm [shape: f32[8,128], index: 3, kind: output, shape index: {}]  }
   0x1   :  { %9 = vsyncpa [#allocation6], 0 }
   0x2   :  { %10 = vsyncpa [#allocation4], 0  ;;  %s2208_s12 = smov [#allocation2]   ;;  %s2209_s14 = smov [#allocation5]  }
   0x3   :  { %s17_s13 = sshll.u32 %s2208_s12, 4  ;;  %s28_s15 = sshll.u32 %s2209_s14, 4  ;;  %s18_s13 = int_to_ptr.vmem [resolvable:$true] %s17_s13  ;;  %s2238_s15 = int_to_ptr.vmem [resolvable:$true] %s28_s15 }
   0x4   :  { %s2136_s18 = scalar_lea.hbm %s2373_s0, 128 }
   0x5   :  { %p2137_p0 = scmp.ne.s32.totalorder %s2373_s0, %s2136_s18  ;;  %p2140_p1 = scmp.lt.u32.totalorder %s2136_s18, %s2373_s0 }
   0x7   :  { %p2142_p2 = pnand %p2140_p1, %p2137_p0 }
   0x9   :  { %2145 = shalt.err (!%p2142_p2)
}
   0xa   :  { %s2146_s23 = scalar_lea.vmem %s18_s13, 128  ;;  %p2151_p4 = scmp.lt.s32.totalorder %s18_s13, %s18_s13 }
   0xb   :  { %p2147_p3 = scmp.ne.s32.totalorder %s18_s13, %s2146_s23  ;;  %p2152_p5 = scmp.lt.s32.totalorder %s2146_s23, %s2146_s23 }
   0xd   :  { %p2153_p6 = por %p2152_p5, %p2151_p4 }
   0xf   :  { %p2154_p7 = pnand %p2153_p6, %p2147_p3 }
  0x11   :  { %2157 = shalt.err (!%p2154_p7)
}
  0x12   :  { %20 = dma.hbm_to_vmem [thread:$0]  %s2373_s0, 128, %s18_s13, [#allocation3]  }
  0x13   :  { %s2158_s28 = scalar_lea.hbm %s2375_s2, 95232 }
  0x14   :  { %p2159_p8 = scmp.ne.s32.totalorder %s2375_s2, %s2158_s28  ;;  %p2162_p9 = scmp.lt.u32.totalorder %s2158_s28, %s2375_s2 }
  0x16   :  { %p2164_p10 = pnand %p2162_p9, %p2159_p8 }
  0x18   :  { %2167 = shalt.err (!%p2164_p10)
}
  0x19   :  { %s2168_s6 = scalar_lea.vmem %s2238_s15, 95232  ;;  %p2173_p12 = scmp.lt.s32.totalorder %s2238_s15, %s2238_s15 }
  0x1a   :  { %p2169_p11 = scmp.ne.s32.totalorder %s2238_s15, %s2168_s6  ;;  %p2174_p13 = scmp.lt.s32.totalorder %s2168_s6, %s2168_s6 }
  0x1c   :  { %p2175_p0 = por %p2174_p13, %p2173_p12 }
  0x1e   :  { %p2176_p1 = pnand %p2175_p0, %p2169_p11 }
  0x20   :  { %2179 = shalt.err (!%p2176_p1)
}
  0x21   :  { %s2210_s0 = smov 512   ;;  %s2211_s7 = smov 32  }
  0x22   :  { %34 = dma.hbm_to_vmem [thread:$0]  %s2375_s2, 95232, %s2238_s15, [#allocation6], %s2210_s0, %s2210_s0, %s2211_s7  }
  0x23   :  { %2202 = dma.done.wait [#allocation3], 128  }
  0x24   :  { %2203 = vsyncadd [#allocation3], 4294967168 }
  0x25   :  { %2204 = dma.done.wait [#allocation6], 95232  }
  0x26   :  { %2205 = vsyncadd [#allocation6], 4294872064  ;;  %v2212_v0 = vmov 0.0   ;;  %v44_v1 = vld [vmem:[#allocation5 + $0x8] sm:$0xff]  ;;  %v43_v3 = vld [vmem:[#allocation5] sm:$0xff]  ;;  %vm74_vm0 = vcmask 130048  }
  0x27   :  { %142 = vmatprep.mubr.f32.mxu0 %v2212_v0  ;;  %213 = vmatprep.mubr.f32.mxu1 %v2212_v0  ;;  %v48_v2 = vld [vmem:[#allocation5 + $0x28] sm:$0xff]  ;;  %v47_v5 = vld [vmem:[#allocation5 + $0x20] sm:$0xff]  ;;  %v46_v6 = vld [vmem:[#allocation5 + $0x18] sm:$0xff]  ;;  %vm2214_vm1 = vmmov 0   ;;  %s2215_s11 = smov 127   ;;  %vm1118_vm2 = vcmask 1042432  }
  0x28   :  { %v1767_v4 = vpack.c.bf16 %v48_v2, %v44_v1  ;;  %v1769_v7 = vpack.c.bf16 %v47_v5, %v43_v3  ;;  %v41_v8 = vld [vmem:[#allocation2] sm:$0xff]  ;;  %v45_v10 = vld [vmem:[#allocation5 + $0x10] sm:$0xff]  ;;  %v225_v14 = vld [vmem:[#allocation5 + $0x68] sm:$0xff]  ;;  %vm1099_vm3 = vcmask 23552  }
  0x29   :  { %v50_v9 = vld [vmem:[#allocation5 + $0x38] sm:$0xff]  ;;  %v49_v11 = vld [vmem:[#allocation5 + $0x30] sm:$0xff]  ;;  %v228_v15 = vld [vmem:[#allocation5 + $0x88] sm:$0xff] }
  0x2a   :  { %1768 = vmatprep.subr.bf16.mxu0 %v1767_v4  ;;  %v1771_v12 = vpack.c.bf16 %v50_v9, %v46_v6  ;;  %v1773_v13 = vpack.c.bf16 %v49_v11, %v45_v10  ;;  %v224_v16 = vld [vmem:[#allocation5 + $0x60] sm:$0xff]  ;;  %v1775_v17 = vpack.c.bf16 %v228_v15, %v225_v14  ;;  %v231_v19 = vld [vmem:[#allocation5 + $0xa8] sm:$0xff]  ;;  %v274_v39 = vld [vmem:[#allocation5 + $0x270] sm:$0xff] }
  0x2b   :  { %1770 = vmatpush1.bf16.msra.mxu0 %v1769_v7  ;;  %v227_v18 = vld [vmem:[#allocation5 + $0x80] sm:$0xff]  ;;  %v234_v20 = vld [vmem:[#allocation5 + $0xc8] sm:$0xff]  ;;  %v277_v40 = vld [vmem:[#allocation5 + $0x290] sm:$0xff] }
  0x2c   :  { %1772 = vmatprep.subr.bf16.mxu1 %v1771_v12  ;;  %v1777_v21 = vpack.c.bf16 %v227_v18, %v224_v16  ;;  %v1779_v22 = vpack.c.bf16 %v234_v20, %v231_v19  ;;  %v230_v23 = vld [vmem:[#allocation5 + $0xa0] sm:$0xff]  ;;  %1776 = vmatprep.subr.bf16.mxu0 %v1775_v17  ;;  %v237_v25 = vld [vmem:[#allocation5 + $0xe8] sm:$0xff]  ;;  %v1903_v41 = vpack.c.bf16 %v277_v40, %v274_v39  ;;  %v226_v42 = vld [vmem:[#allocation5 + $0x70] sm:$0xff] }
  0x2d   :  { %v233_v24 = vld [vmem:[#allocation5 + $0xc0] sm:$0xff]  ;;  %1774 = vmatpush1.bf16.msra.mxu1 %v1773_v13  ;;  %v240_v26 = vld [vmem:[#allocation5 + $0x108] sm:$0xff]  ;;  %v229_v46 = vld [vmem:[#allocation5 + $0x90] sm:$0xff] }
  0x2e   :  { %1391 = vmatmul.mubr.msk.f32.vlgmr.msra.gmra.mrb[0].mxu0 %vm74_vm0, %v41_v8  ;;  %v1781_v27 = vpack.c.bf16 %v233_v24, %v230_v23  ;;  %v1783_v28 = vpack.c.bf16 %v240_v26, %v237_v25  ;;  %v236_v29 = vld [vmem:[#allocation5 + $0xe0] sm:$0xff]  ;;  %v243_v31 = vld [vmem:[#allocation5 + $0x128] sm:$0xff]  ;;  %1904 = vmatprep.subr.bf16.mxu1 %v1903_v41  ;;  %v1905_v49 = vpack.c.bf16 %v229_v46, %v226_v42  ;;  %v280_v50 = vld [vmem:[#allocation5 + $0x2b0] sm:$0xff] }
  0x2f   :  { %1778 = vmatpush1.bf16.msra.mxu0 %v1777_v21  ;;  %v239_v30 = vld [vmem:[#allocation5 + $0x100] sm:$0xff]  ;;  %v246_v32 = vld [vmem:[#allocation5 + $0x148] sm:$0xff]  ;;  %v283_v51 = vld [vmem:[#allocation5 + $0x2d0] sm:$0xff] }
  0x30   :  { %1392 = vmatmul.mubr.msk.f32.vlgmr.msra.gmra.mrb[0].mxu1 %vm74_vm0, %v41_v8  ;;  %1780 = vmatprep.subr.bf16.mxu0 %v1779_v22  ;;  %v1785_v33 = vpack.c.bf16 %v239_v30, %v236_v29  ;;  %v1787_v34 = vpack.c.bf16 %v246_v32, %v243_v31  ;;  %v242_v35 = vld [vmem:[#allocation5 + $0x120] sm:$0xff]  ;;  %v249_v37 = vld [vmem:[#allocation5 + $0x168] sm:$0xff]  ;;  %v1907_v53 = vpack.c.bf16 %v283_v51, %v280_v50  ;;  %v232_v54 = vld [vmem:[#allocation5 + $0xb0] sm:$0xff] }
  0x31   :  { %v245_v36 = vld [vmem:[#allocation5 + $0x140] sm:$0xff]  ;;  %v252_v38 = vld [vmem:[#allocation5 + $0x188] sm:$0xff]  ;;  %v235_v55 = vld [vmem:[#allocation5 + $0xd0] sm:$0xff]  ;;  %1906 = vmatpush3.bf16.msra.mxu1 %v1905_v49 }
  0x32   :  { %v1789_v43 = vpack.c.bf16 %v245_v36, %v242_v35  ;;  %v248_v44 = vld [vmem:[#allocation5 + $0x160] sm:$0xff]  ;;  %v1791_v47 = vpack.c.bf16 %v252_v38, %v249_v37  ;;  %v255_v48 = vld [vmem:[#allocation5 + $0x1a8] sm:$0xff]  ;;  %v1909_v56 = vpack.c.bf16 %v235_v55, %v232_v54  ;;  %v286_v57 = vld [vmem:[#allocation5 + $0x2f0] sm:$0xff]  ;;  %1908 = vmatprep.subr.bf16.mxu1 %v1907_v53 }
  0x33   :  { %1782 = vmatpush1.bf16.msra.mxu0 %v1781_v27  ;;  %v251_v45 = vld [vmem:[#allocation5 + $0x180] sm:$0xff]  ;;  %v258_v52 = vld [vmem:[#allocation5 + $0x1c8] sm:$0xff]  ;;  %v289_v61 = vld [vmem:[#allocation5 + $0x310] sm:$0xff] }
  0x34   :  { %1784 = vmatprep.subr.bf16.mxu0 %v1783_v28  ;;  %v1793_v58 = vpack.c.bf16 %v251_v45, %v248_v44  ;;  %v254_v59 = vld [vmem:[#allocation5 + $0x1a0] sm:$0xff]  ;;  %v1795_v62 = vpack.c.bf16 %v258_v52, %v255_v48  ;;  %v261_v63 = vld [vmem:[#allocation5 + $0x1e8] sm:$0xff]  ;;  %v1911_v1 = vpack.c.bf16 %v289_v61, %v286_v57  ;;  %v238_v2 = vld [vmem:[#allocation5 + $0xf0] sm:$0xff] }
  0x35   :  { %v257_v60 = vld [vmem:[#allocation5 + $0x1c0] sm:$0xff]  ;;  %v241_v3 = vld [vmem:[#allocation5 + $0x110] sm:$0xff]  ;;  %v264_v4 = vld [vmem:[#allocation5 + $0x208] sm:$0xff]  ;;  %1910 = vmatpush3.bf16.msra.mxu1 %v1909_v56 }
  0x36   :  { %v292_v5 = vld [vmem:[#allocation5 + $0x330] sm:$0xff]  ;;  %v1913_v7 = vpack.c.bf16 %v241_v3, %v238_v2  ;;  %v1797_v8 = vpack.c.bf16 %v257_v60, %v254_v59  ;;  %v260_v9 = vld [vmem:[#allocation5 + $0x1e0] sm:$0xff]  ;;  %1912 = vmatprep.subr.bf16.mxu1 %v1911_v1  ;;  %v1799_v13 = vpack.c.bf16 %v264_v4, %v261_v63  ;;  %v267_v17 = vld [vmem:[#allocation5 + $0x228] sm:$0xff] }
  0x37   :  { %1786 = vmatpush1.bf16.msra.mxu0 %v1785_v33  ;;  %v295_v6 = vld [vmem:[#allocation5 + $0x350] sm:$0xff]  ;;  %v263_v14 = vld [vmem:[#allocation5 + $0x200] sm:$0xff]  ;;  %v270_v18 = vld [vmem:[#allocation5 + $0x248] sm:$0xff] }
  0x38   :  { %1788 = vmatprep.subr.bf16.mxu0 %v1787_v34  ;;  %v1915_v10 = vpack.c.bf16 %v295_v6, %v292_v5  ;;  %v244_v11 = vld [vmem:[#allocation5 + $0x130] sm:$0xff]  ;;  %v1801_v20 = vpack.c.bf16 %v263_v14, %v260_v9  ;;  %v266_v21 = vld [vmem:[#allocation5 + $0x220] sm:$0xff]  ;;  %v1803_v25 = vpack.c.bf16 %v270_v18, %v267_v17  ;;  %v273_v29 = vld [vmem:[#allocation5 + $0x268] sm:$0xff] }
  0x39   :  { %v247_v12 = vld [vmem:[#allocation5 + $0x150] sm:$0xff]  ;;  %1914 = vmatpush3.bf16.msra.mxu1 %v1913_v7  ;;  %v269_v26 = vld [vmem:[#allocation5 + $0x240] sm:$0xff]  ;;  %v276_v30 = vld [vmem:[#allocation5 + $0x288] sm:$0xff] }
  0x3a   :  { %v298_v15 = vld [vmem:[#allocation5 + $0x370] sm:$0xff]  ;;  %v1917_v19 = vpack.c.bf16 %v247_v12, %v244_v11  ;;  %1916 = vmatprep.subr.bf16.mxu1 %v1915_v10  ;;  %v1805_v32 = vpack.c.bf16 %v269_v26, %v266_v21  ;;  %v272_v33 = vld [vmem:[#allocation5 + $0x260] sm:$0xff]  ;;  %v1807_v37 = vpack.c.bf16 %v276_v30, %v273_v29  ;;  %v279_v41 = vld [vmem:[#allocation5 + $0x2a8] sm:$0xff] }
  0x3b   :  { %1790 = vmatpush1.bf16.msra.mxu0 %v1789_v43  ;;  %v301_v16 = vld [vmem:[#allocation5 + $0x390] sm:$0xff]  ;;  %v275_v38 = vld [vmem:[#allocation5 + $0x280] sm:$0xff]  ;;  %v282_v42 = vld [vmem:[#allocation5 + $0x2c8] sm:$0xff] }
  0x3c   :  { %1792 = vmatprep.subr.bf16.mxu0 %v1791_v47  ;;  %v1919_v22 = vpack.c.bf16 %v301_v16, %v298_v15  ;;  %v250_v23 = vld [vmem:[#allocation5 + $0x170] sm:$0xff]  ;;  %v1809_v44 = vpack.c.bf16 %v275_v38, %v272_v33  ;;  %v1811_v48 = vpack.c.bf16 %v282_v42, %v279_v41  ;;  %v278_v49 = vld [vmem:[#allocation5 + $0x2a0] sm:$0xff]  ;;  %v285_v51 = vld [vmem:[#allocation5 + $0x2e8] sm:$0xff]  ;;  %v54_v38 = vlaneseq }
  0x3d   :  { %v253_v24 = vld [vmem:[#allocation5 + $0x190] sm:$0xff]  ;;  %1918 = vmatpush3.bf16.msra.mxu1 %v1917_v19  ;;  %v281_v50 = vld [vmem:[#allocation5 + $0x2c0] sm:$0xff]  ;;  %v288_v52 = vld [vmem:[#allocation5 + $0x308] sm:$0xff] }
  0x3e   :  { %v304_v27 = vld [vmem:[#allocation5 + $0x3b0] sm:$0xff]  ;;  %v1921_v31 = vpack.c.bf16 %v253_v24, %v250_v23  ;;  %1920 = vmatprep.subr.bf16.mxu1 %v1919_v22  ;;  %v1813_v54 = vpack.c.bf16 %v281_v50, %v278_v49  ;;  %v1815_v55 = vpack.c.bf16 %v288_v52, %v285_v51  ;;  %v284_v56 = vld [vmem:[#allocation5 + $0x2e0] sm:$0xff]  ;;  %v294_v59 = vld [vmem:[#allocation5 + $0x348] sm:$0xff] }
  0x3f   :  { %1794 = vmatpush1.bf16.msra.mxu0 %v1793_v58  ;;  %v307_v28 = vld [vmem:[#allocation5 + $0x3d0] sm:$0xff]  ;;  %v287_v57 = vld [vmem:[#allocation5 + $0x300] sm:$0xff]  ;;  %v291_v58 = vld [vmem:[#allocation5 + $0x328] sm:$0xff] }
  0x40   :  { %1796 = vmatprep.subr.bf16.mxu0 %v1795_v62  ;;  %v1923_v34 = vpack.c.bf16 %v307_v28, %v304_v27  ;;  %v256_v35 = vld [vmem:[#allocation5 + $0x1b0] sm:$0xff]  ;;  %v1817_v60 = vpack.c.bf16 %v287_v57, %v284_v56  ;;  %v1819_v61 = vpack.c.bf16 %v294_v59, %v291_v58  ;;  %v290_v62 = vld [vmem:[#allocation5 + $0x320] sm:$0xff]  ;;  %v297_v1 = vld [vmem:[#allocation5 + $0x368] sm:$0xff] }
  0x41   :  { %v259_v36 = vld [vmem:[#allocation5 + $0x1d0] sm:$0xff]  ;;  %1922 = vmatpush3.bf16.msra.mxu1 %v1921_v31  ;;  %v293_v63 = vld [vmem:[#allocation5 + $0x340] sm:$0xff]  ;;  %v300_v2 = vld [vmem:[#allocation5 + $0x388] sm:$0xff] }
  0x42   :  { %v310_v39 = vld [vmem:[#allocation5 + $0x3f0] sm:$0xff]  ;;  %v1925_v43 = vpack.c.bf16 %v259_v36, %v256_v35  ;;  %1924 = vmatprep.subr.bf16.mxu1 %v1923_v34  ;;  %v1821_v3 = vpack.c.bf16 %v293_v63, %v290_v62  ;;  %v1823_v4 = vpack.c.bf16 %v300_v2, %v297_v1  ;;  %v296_v5 = vld [vmem:[#allocation5 + $0x360] sm:$0xff]  ;;  %v303_v7 = vld [vmem:[#allocation5 + $0x3a8] sm:$0xff] }
  0x43   :  { %1798 = vmatpush1.bf16.msra.mxu0 %v1797_v8  ;;  %v313_v40 = vld [vmem:[#allocation5 + $0x410] sm:$0xff]  ;;  %v299_v6 = vld [vmem:[#allocation5 + $0x380] sm:$0xff]  ;;  %v306_v8 = vld [vmem:[#allocation5 + $0x3c8] sm:$0xff] }
  0x44   :  { %1800 = vmatprep.subr.bf16.mxu0 %v1799_v13  ;;  %v1927_v45 = vpack.c.bf16 %v313_v40, %v310_v39  ;;  %v262_v46 = vld [vmem:[#allocation5 + $0x1f0] sm:$0xff]  ;;  %v1825_v9 = vpack.c.bf16 %v299_v6, %v296_v5  ;;  %v1827_v10 = vpack.c.bf16 %v306_v8, %v303_v7  ;;  %v302_v11 = vld [vmem:[#allocation5 + $0x3a0] sm:$0xff]  ;;  %v309_v13 = vld [vmem:[#allocation5 + $0x3e8] sm:$0xff]  ;;  %v2274_v39 = vshrl.u32 %v54_v38, 7 }
  0x45   :  { %v265_v47 = vld [vmem:[#allocation5 + $0x210] sm:$0xff]  ;;  %1926 = vmatpush3.bf16.msra.mxu1 %v1925_v43  ;;  %v305_v12 = vld [vmem:[#allocation5 + $0x3c0] sm:$0xff]  ;;  %v312_v14 = vld [vmem:[#allocation5 + $0x408] sm:$0xff] }
  0x46   :  { %v1929_v53 = vpack.c.bf16 %v265_v47, %v262_v46  ;;  %1928 = vmatprep.subr.bf16.mxu1 %v1927_v45  ;;  %v1829_v15 = vpack.c.bf16 %v305_v12, %v302_v11  ;;  %v1831_v16 = vpack.c.bf16 %v312_v14, %v309_v13  ;;  %v308_v17 = vld [vmem:[#allocation5 + $0x3e0] sm:$0xff]  ;;  %v318_v21 = vld [vmem:[#allocation5 + $0x448] sm:$0xff]  ;;  %v316_v22 = vld [vmem:[#allocation5 + $0x430] sm:$0xff]  ;;  %v56_v40 = vsub.s32 0, %v2274_v39 }
  0x47   :  { %1802 = vmatpush1.bf16.msra.mxu0 %v1801_v20  ;;  %v311_v18 = vld [vmem:[#allocation5 + $0x400] sm:$0xff]  ;;  %v315_v20 = vld [vmem:[#allocation5 + $0x428] sm:$0xff]  ;;  %v319_v24 = vld [vmem:[#allocation5 + $0x450] sm:$0xff]  ;;  %v60_v42 = vsub.s32 1, %v2274_v39  ;;  %v68_v43 = vsub.s32 3, %v2274_v39 }
  0x48   :  { %1804 = vmatprep.subr.bf16.mxu0 %v1803_v25  ;;  %v1833_v19 = vpack.c.bf16 %v311_v18, %v308_v17  ;;  %v1835_v23 = vpack.c.bf16 %v318_v21, %v315_v20  ;;  %v314_v25 = vld [vmem:[#allocation5 + $0x420] sm:$0xff]  ;;  %v1931_v27 = vpack.c.bf16 %v319_v24, %v316_v22  ;;  %v268_v29 = vld [vmem:[#allocation5 + $0x230] sm:$0xff]  ;;  %v324_v33 = vld [vmem:[#allocation5 + $0x488] sm:$0xff] }
  0x49   :  { %1930 = vmatpush3.bf16.msra.mxu1 %v1929_v53  ;;  %v317_v26 = vld [vmem:[#allocation5 + $0x440] sm:$0xff]  ;;  %v271_v30 = vld [vmem:[#allocation5 + $0x250] sm:$0xff]  ;;  %v330_v56 = vld [vmem:[#allocation5 + $0x4c8] sm:$0xff] }
  0x4a   :  { %v1837_v28 = vpack.c.bf16 %v317_v26, %v314_v25  ;;  %v1933_v31 = vpack.c.bf16 %v271_v30, %v268_v29  ;;  %1932 = vmatprep.subr.bf16.mxu1 %v1931_v27  ;;  %v370_v34 = vld [vmem:[#allocation5 + $0x670] sm:$0xff]  ;;  %v320_v47 = vld [vmem:[#allocation5 + $0x460] sm:$0xff]  ;;  %v339_v22 = vld [vmem:[#allocation5 + $0x528] sm:$0xff] }
  0x4b   :  { %1806 = vmatpush1.bf16.msra.mxu0 %v1805_v32  ;;  %v321_v32 = vld [vmem:[#allocation5 + $0x468] sm:$0xff]  ;;  %v373_v36 = vld [vmem:[#allocation5 + $0x690] sm:$0xff]  ;;  %v326_v1 = vld [vmem:[#allocation5 + $0x4a0] sm:$0xff] }
  0x4c   :  { %1808 = vmatprep.subr.bf16.mxu0 %v1807_v37  ;;  %v1839_v35 = vpack.c.bf16 %v324_v33, %v321_v32  ;;  %v1935_v37 = vpack.c.bf16 %v373_v36, %v370_v34  ;;  %v2277_v41 = vld [vmem:[#allocation5 + $0x40] ss:$8 sm:$0xf] }
  0x4d   :  { %1934 = vmatpush3.bf16.msra.mxu1 %v1933_v31  ;;  %v61_v45 = vrot.slane %v2277_v41, %v60_v42  ;;  %v69_v49 = vrot.slane %v2277_v41, %v68_v43  ;;  %v322_v52 = vld [vmem:[#allocation5 + $0x470] sm:$0xff]  ;;  %v329_v2 = vld [vmem:[#allocation5 + $0x4c0] sm:$0xff]  ;;  %v345_v34 = vld [vmem:[#allocation5 + $0x568] sm:$0xff] }
  0x4e   :  { %1936 = vmatprep.subr.bf16.mxu1 %v1935_v37  ;;  %v325_v53 = vld [vmem:[#allocation5 + $0x490] sm:$0xff]  ;;  %v1845_v14 = vpack.c.bf16 %v329_v2, %v326_v1  ;;  %v335_v17 = vld [vmem:[#allocation5 + $0x500] sm:$0xff]  ;;  %v357_v1 = vld [vmem:[#allocation5 + $0x5e8] sm:$0xff] }
  0x4f   :  { %1810 = vmatpush1.bf16.msra.mxu0 %v1809_v44  ;;  %v57_v44 = vrot.slane %v2277_v41, %v56_v40  ;;  %v376_v57 = vld [vmem:[#allocation5 + $0x6b0] sm:$0xff]  ;;  %v1937_v63 = vpack.c.bf16 %v325_v53, %v322_v52  ;;  %v341_v29 = vld [vmem:[#allocation5 + $0x540] sm:$0xff]  ;;  %v354_v52 = vld [vmem:[#allocation5 + $0x5c8] sm:$0xff] }
  0x50   :  { %1812 = vmatprep.subr.bf16.mxu0 %v1811_v48  ;;  %v323_v48 = vld [vmem:[#allocation5 + $0x480] sm:$0xff]  ;;  %v379_v58 = vld [vmem:[#allocation5 + $0x6d0] sm:$0xff]  ;;  %v360_v2 = vld [vmem:[#allocation5 + $0x608] sm:$0xff] }
  0x51   :  { %v1841_v62 = vpack.c.bf16 %v323_v48, %v320_v47  ;;  %v1939_v6 = vpack.c.bf16 %v379_v58, %v376_v57  ;;  %v328_v7 = vld [vmem:[#allocation5 + $0x4b0] sm:$0xff]  ;;  %v350_v57 = vld [vmem:[#allocation5 + $0x5a0] sm:$0xff] }
  0x52   :  { %v331_v8 = vld [vmem:[#allocation5 + $0x4d0] sm:$0xff]  ;;  %v353_v58 = vld [vmem:[#allocation5 + $0x5c0] sm:$0xff] }
  0x53   :  { %1814 = vmatpush1.bf16.msra.mxu0 %v1813_v54  ;;  %v327_v54 = vld [vmem:[#allocation5 + $0x4a8] sm:$0xff]  ;;  %v382_v11 = vld [vmem:[#allocation5 + $0x6f0] sm:$0xff] }
  0x54   :  { %1816 = vmatprep.subr.bf16.mxu0 %v1815_v55  ;;  %v1843_v5 = vpack.c.bf16 %v330_v56, %v327_v54  ;;  %v385_v12 = vld [vmem:[#allocation5 + $0x710] sm:$0xff] }
  0x55   :  { %v334_v20 = vld [vmem:[#allocation5 + $0x4f0] sm:$0xff] }
  0x56   :  { %v337_v21 = vld [vmem:[#allocation5 + $0x510] sm:$0xff] }
  0x57   :  { %1818 = vmatpush1.bf16.msra.mxu0 %v1817_v60  ;;  %v388_v24 = vld [vmem:[#allocation5 + $0x730] sm:$0xff]  ;;  %v1945_v27 = vpack.c.bf16 %v337_v21, %v334_v20  ;;  %v362_v21 = vld [vmem:[#allocation5 + $0x620] sm:$0xff] }
  0x58   :  { %1820 = vmatprep.subr.bf16.mxu0 %v1819_v61  ;;  %v391_v25 = vld [vmem:[#allocation5 + $0x750] sm:$0xff] }
  0x59   :  { %v1947_v31 = vpack.c.bf16 %v391_v25, %v388_v24  ;;  %v340_v32 = vld [vmem:[#allocation5 + $0x530] sm:$0xff]  ;;  %v365_v24 = vld [vmem:[#allocation5 + $0x640] sm:$0xff] }
  0x5a   :  { %v343_v33 = vld [vmem:[#allocation5 + $0x550] sm:$0xff] }
  0x5b   :  { %1822 = vmatpush1.bf16.msra.mxu0 %v1821_v3  ;;  %v394_v36 = vld [vmem:[#allocation5 + $0x770] sm:$0xff] }
  0x5c   :  { %1824 = vmatprep.subr.bf16.mxu0 %v1823_v4  ;;  %v397_v37 = vld [vmem:[#allocation5 + $0x790] sm:$0xff] }
  0x5d   :  { %v1951_v48 = vpack.c.bf16 %v397_v37, %v394_v36  ;;  %v400_v53 = vld [vmem:[#allocation5 + $0x7b0] sm:$0xff] }
  0x5e   :  { %v403_v54 = vld [vmem:[#allocation5 + $0x7d0] sm:$0xff] }
  0x5f   :  { %1826 = vmatpush1.bf16.msra.mxu0 %v1825_v9  ;;  %v333_v9 = vld [vmem:[#allocation5 + $0x4e8] sm:$0xff]  ;;  %v364_v25 = vld [vmem:[#allocation5 + $0x630] sm:$0xff] }
  0x60   :  { %1828 = vmatprep.subr.bf16.mxu0 %v1827_v10  ;;  %v336_v10 = vld [vmem:[#allocation5 + $0x508] sm:$0xff] }
  0x61   :  { %v1847_v18 = vpack.c.bf16 %v336_v10, %v333_v9  ;;  %v359_v9 = vld [vmem:[#allocation5 + $0x600] sm:$0xff]  ;;  %v1863_v10 = vpack.c.bf16 %v360_v2, %v357_v1  ;;  %v399_v1 = vld [vmem:[#allocation5 + $0x7a8] sm:$0xff] }
  0x62   :  { %v402_v2 = vld [vmem:[#allocation5 + $0x7c8] sm:$0xff] }
  0x63   :  { %1830 = vmatpush1.bf16.msra.mxu0 %v1829_v15  ;;  %v1941_v15 = vpack.c.bf16 %v331_v8, %v328_v7  ;;  %v356_v8 = vld [vmem:[#allocation5 + $0x5e0] sm:$0xff] }
  0x64   :  { %1832 = vmatprep.subr.bf16.mxu0 %v1831_v16  ;;  %v332_v16 = vld [vmem:[#allocation5 + $0x4e0] sm:$0xff] }
  0x65   :  { %v1849_v26 = vpack.c.bf16 %v335_v17, %v332_v16  ;;  %v412_v16 = vld [vmem:[#allocation5 + $0x830] sm:$0xff] }
  0x66   :  { %v415_v17 = vld [vmem:[#allocation5 + $0x850] sm:$0xff] }
  0x67   :  { %1834 = vmatpush1.bf16.msra.mxu0 %v1833_v19  ;;  %v1943_v19 = vpack.c.bf16 %v385_v12, %v382_v11  ;;  %v358_v12 = vld [vmem:[#allocation5 + $0x5f0] sm:$0xff] }
  0x68   :  { %1836 = vmatprep.subr.bf16.mxu0 %v1835_v23  ;;  %v342_v23 = vld [vmem:[#allocation5 + $0x548] sm:$0xff] }
  0x69   :  { %v1851_v30 = vpack.c.bf16 %v342_v23, %v339_v22  ;;  %v1963_v23 = vpack.c.bf16 %v415_v17, %v412_v16 }
  0x6b   :  { %1838 = vmatpush1.bf16.msra.mxu0 %v1837_v28  ;;  %v338_v28 = vld [vmem:[#allocation5 + $0x520] sm:$0xff] }
  0x6c   :  { %1840 = vmatprep.subr.bf16.mxu0 %v1839_v35  ;;  %v348_v35 = vld [vmem:[#allocation5 + $0x588] sm:$0xff]  ;;  %v1853_v43 = vpack.c.bf16 %v341_v29, %v338_v28 }
  0x6d   :  { %v1855_v47 = vpack.c.bf16 %v348_v35, %v345_v34  ;;  %v372_v28 = vld [vmem:[#allocation5 + $0x688] sm:$0xff] }
  0x6e   :  { %v375_v34 = vld [vmem:[#allocation5 + $0x6a8] sm:$0xff] }
  0x6f   :  { %v378_v35 = vld [vmem:[#allocation5 + $0x6c8] sm:$0xff] }
 0x101   :  { %v144_v46 = vpop.f32.mrb[0].mxu0 }
 0x102   :  { %v145_v50 = vadd.f32 %v144_v46, %v57_v44  ;;  %v146_v51 = vpop.f32.mrb[1].mxu0  ;;  %v1949_v44 = vpack.c.bf16 %v343_v33, %v340_v32  ;;  %v347_v46 = vld [vmem:[#allocation5 + $0x580] sm:$0xff] }
 0x103   :  { %v147_v55 = vadd.f32 %v146_v51, %v61_v45  ;;  %v2288_v59 = vpop.f32.mrb[0].mxu1  ;;  %v344_v45 = vld [vmem:[#allocation5 + $0x560] sm:$0xff]  ;;  %v351_v51 = vld [vmem:[#allocation5 + $0x5a8] sm:$0xff] }
 0x104   :  { %v217_v60 = vpop.f32.mrb[1].mxu1  ;;  %v220_v4 = vmax.f32 %v145_v50, 0.0  ;;  %v349_v50 = vld [vmem:[#allocation5 + $0x590] sm:$0xff]  ;;  %v368_v32 = vld [vmem:[#allocation5 + $0x660] sm:$0xff] }
 0x105   :  { %v221_v61 = vmax.f32 %v147_v55, 0.0  ;;  %v218_v3 = vadd.f32 %v217_v60, %v69_v49  ;;  %v346_v49 = vld [vmem:[#allocation5 + $0x570] sm:$0xff]  ;;  %v1857_v55 = vpack.c.bf16 %v347_v46, %v344_v45  ;;  %v1859_v60 = vpack.c.bf16 %v354_v52, %v351_v51  ;;  %v371_v33 = vld [vmem:[#allocation5 + $0x680] sm:$0xff]  ;;  %v381_v45 = vld [vmem:[#allocation5 + $0x6e8] sm:$0xff] }
 0x106   :  { %v1953_v56 = vpack.c.bf16 %v349_v50, %v346_v49  ;;  %v1873_v37 = vpack.c.bf16 %v371_v33, %v368_v32  ;;  %v384_v46 = vld [vmem:[#allocation5 + $0x708] sm:$0xff]  ;;  %v380_v49 = vld [vmem:[#allocation5 + $0x6e0] sm:$0xff] }
 0x107   :  { %498 = vmatprep.mubr.f32.mxu0 %v221_v61  ;;  %640 = vmatprep.mubr.f32.mxu1 %v221_v61  ;;  %v223_v13 = vmax.f32 %v218_v3, 0.0  ;;  %v1955_v61 = vpack.c.bf16 %v403_v54, %v400_v53  ;;  %v406_v3 = vld [vmem:[#allocation5 + $0x7f0] sm:$0xff]  ;;  %v383_v50 = vld [vmem:[#allocation5 + $0x700] sm:$0xff]  ;;  %v387_v51 = vld [vmem:[#allocation5 + $0x728] sm:$0xff] }
 0x108   :  { %499 = vmatmul.mubr.f32.vlgmr.msra.gmra.mrb[2].mxu0 %v220_v4  ;;  %641 = vmatmul.mubr.f32.vlgmr.msra.gmra.mrb[2].mxu1 %v220_v4  ;;  %v409_v4 = vld [vmem:[#allocation5 + $0x810] sm:$0xff]  ;;  %v390_v52 = vld [vmem:[#allocation5 + $0x748] sm:$0xff]  ;;  %v1881_v53 = vpack.c.bf16 %v383_v50, %v380_v49  ;;  %v740_v32 = vld [vmem:[#allocation5 + $0xb20] sm:$0xff] }
 0x109   :  { %1842 = vmatpush1.bf16.msra.mxu0 %v1841_v62  ;;  %1938 = vmatpush3.bf16.msra.mxu1 %v1937_v63  ;;  %v352_v62 = vld [vmem:[#allocation5 + $0x5b0] sm:$0xff]  ;;  %v1959_v11 = vpack.c.bf16 %v409_v4, %v406_v3  ;;  %v1883_v54 = vpack.c.bf16 %v390_v52, %v387_v51  ;;  %v1891_v4 = vpack.c.bf16 %v402_v2, %v399_v1  ;;  %v727_v51 = vld [vmem:[#allocation5 + $0x980] sm:$0xff] }
 0x10a   :  { %1844 = vmatprep.subr.bf16.mxu0 %v1843_v5  ;;  %1940 = vmatprep.subr.bf16.mxu1 %v1939_v6  ;;  %v355_v63 = vld [vmem:[#allocation5 + $0x5d0] sm:$0xff]  ;;  %v64_v5 = vsub.s32 2, %v2274_v39  ;;  %v1861_v6 = vpack.c.bf16 %v353_v58, %v350_v57  ;;  %v393_v57 = vld [vmem:[#allocation5 + $0x768] sm:$0xff]  ;;  %v728_v52 = vld [vmem:[#allocation5 + $0x9a0] sm:$0xff] }
 0x10b   :  { %710 = vmatprep.mubr.f32.mxu1 %v223_v13  ;;  %569 = vmatprep.mubr.f32.mxu0 %v223_v13  ;;  %v1957_v7 = vpack.c.bf16 %v355_v63, %v352_v62  ;;  %v361_v13 = vld [vmem:[#allocation5 + $0x610] sm:$0xff]  ;;  %v396_v58 = vld [vmem:[#allocation5 + $0x788] sm:$0xff]  ;;  %v392_v62 = vld [vmem:[#allocation5 + $0x760] sm:$0xff] }
 0x10c   :  { %v1961_v20 = vpack.c.bf16 %v361_v13, %v358_v12  ;;  %v395_v63 = vld [vmem:[#allocation5 + $0x780] sm:$0xff] }
 0x10d   :  { %1846 = vmatpush1.bf16.msra.mxu0 %v1845_v14  ;;  %1942 = vmatpush3.bf16.msra.mxu1 %v1941_v15  ;;  %v363_v14 = vld [vmem:[#allocation5 + $0x628] sm:$0xff]  ;;  %v1889_v3 = vpack.c.bf16 %v395_v63, %v392_v62  ;;  %v404_v12 = vld [vmem:[#allocation5 + $0x7e0] sm:$0xff] }
 0x10e   :  { %1848 = vmatprep.subr.bf16.mxu0 %v1847_v18  ;;  %1944 = vmatprep.subr.bf16.mxu1 %v1943_v19  ;;  %v366_v15 = vld [vmem:[#allocation5 + $0x648] sm:$0xff]  ;;  %v65_v18 = vrot.slane %v2277_v41, %v64_v5  ;;  %v1865_v19 = vpack.c.bf16 %v359_v9, %v356_v8  ;;  %v1869_v41 = vpack.c.bf16 %v365_v24, %v362_v21  ;;  %v407_v13 = vld [vmem:[#allocation5 + $0x800] sm:$0xff] }
 0x10f   :  { %v1867_v22 = vpack.c.bf16 %v366_v15, %v363_v14  ;;  %v405_v8 = vld [vmem:[#allocation5 + $0x7e8] sm:$0xff]  ;;  %v1897_v16 = vpack.c.bf16 %v407_v13, %v404_v12  ;;  %v735_v21 = vld [vmem:[#allocation5 + $0xa80] sm:$0xff] }
 0x110   :  { %v2295_v29 = vadd.f32 %v2288_v59, %v65_v18  ;;  %v374_v59 = vld [vmem:[#allocation5 + $0x6a0] sm:$0xff]  ;;  %v408_v9 = vld [vmem:[#allocation5 + $0x808] sm:$0xff] }
 0x111   :  { %1850 = vmatpush1.bf16.msra.mxu0 %v1849_v26  ;;  %1946 = vmatpush3.bf16.msra.mxu1 %v1945_v27  ;;  %v367_v26 = vld [vmem:[#allocation5 + $0x650] sm:$0xff]  ;;  %v369_v27 = vld [vmem:[#allocation5 + $0x668] sm:$0xff]  ;;  %v410_v18 = vld [vmem:[#allocation5 + $0x820] sm:$0xff] }
 0x112   :  { %1852 = vmatprep.subr.bf16.mxu0 %v1851_v30  ;;  %1948 = vmatprep.subr.bf16.mxu1 %v1947_v31  ;;  %v1965_v30 = vpack.c.bf16 %v367_v26, %v364_v25  ;;  %v1871_v31 = vpack.c.bf16 %v372_v28, %v369_v27  ;;  %v222_v36 = vmax.f32 %v2295_v29, 0.0  ;;  %v411_v14 = vld [vmem:[#allocation5 + $0x828] sm:$0xff]  ;;  %v719_v24 = vld [vmem:[#allocation5 + $0x880] sm:$0xff] }
 0x113   :  { %v414_v15 = vld [vmem:[#allocation5 + $0x848] sm:$0xff]  ;;  %v720_v25 = vld [vmem:[#allocation5 + $0x8a0] sm:$0xff] }
 0x114   :  { %v1899_v17 = vpack.c.bf16 %v414_v15, %v411_v14  ;;  %v1969_v26 = vpack.c.bf16 %v720_v25, %v719_v24  ;;  %v737_v27 = vld [vmem:[#allocation5 + $0xac0] sm:$0xff] }
 0x115   :  { %1854 = vmatpush1.bf16.msra.mxu0 %v1853_v43  ;;  %1950 = vmatpush3.bf16.msra.mxu1 %v1949_v44  ;;  %v1875_v43 = vpack.c.bf16 %v378_v35, %v375_v34  ;;  %v377_v44 = vld [vmem:[#allocation5 + $0x6c0] sm:$0xff] }
 0x116   :  { %1856 = vmatprep.subr.bf16.mxu0 %v1855_v47  ;;  %1952 = vmatprep.subr.bf16.mxu1 %v1951_v48  ;;  %v1877_v47 = vpack.c.bf16 %v377_v44, %v374_v59  ;;  %v1879_v48 = vpack.c.bf16 %v384_v46, %v381_v45  ;;  %v738_v28 = vld [vmem:[#allocation5 + $0xae0] sm:$0xff] }
 0x117   :  { %v721_v29 = vld [vmem:[#allocation5 + $0x8c0] sm:$0xff] }
 0x118   :  { %v723_v35 = vld [vmem:[#allocation5 + $0x900] sm:$0xff] }
 0x119   :  { %1858 = vmatpush1.bf16.msra.mxu0 %v1857_v55  ;;  %1954 = vmatpush3.bf16.msra.mxu1 %v1953_v56  ;;  %v386_v55 = vld [vmem:[#allocation5 + $0x720] sm:$0xff] }
 0x11a   :  { %1860 = vmatprep.subr.bf16.mxu0 %v1859_v60  ;;  %1956 = vmatprep.subr.bf16.mxu1 %v1955_v61  ;;  %v389_v56 = vld [vmem:[#allocation5 + $0x740] sm:$0xff]  ;;  %v1887_v61 = vpack.c.bf16 %v396_v58, %v393_v57 }
 0x11b   :  { %v1885_v60 = vpack.c.bf16 %v389_v56, %v386_v55  ;;  %v725_v45 = vld [vmem:[#allocation5 + $0x940] sm:$0xff]  ;;  %v1985_v55 = vpack.c.bf16 %v728_v52, %v727_v51 }
 0x11c   :  { %v726_v46 = vld [vmem:[#allocation5 + $0x960] sm:$0xff] }
 0x11d   :  { %1862 = vmatpush1.bf16.msra.mxu0 %v1861_v6  ;;  %1958 = vmatpush3.bf16.msra.mxu1 %v1957_v7  ;;  %v398_v6 = vld [vmem:[#allocation5 + $0x7a0] sm:$0xff]  ;;  %v1981_v49 = vpack.c.bf16 %v726_v46, %v725_v45 }
 0x11e   :  { %1864 = vmatprep.subr.bf16.mxu0 %v1863_v10  ;;  %1960 = vmatprep.subr.bf16.mxu1 %v1959_v11  ;;  %v401_v7 = vld [vmem:[#allocation5 + $0x7c0] sm:$0xff]  ;;  %v1895_v11 = vpack.c.bf16 %v408_v9, %v405_v8 }
 0x11f   :  { %v1893_v10 = vpack.c.bf16 %v401_v7, %v398_v6  ;;  %v729_v57 = vld [vmem:[#allocation5 + $0x9c0] sm:$0xff] }
 0x120   :  { %v730_v58 = vld [vmem:[#allocation5 + $0x9e0] sm:$0xff] }
 0x121   :  { %1866 = vmatpush1.bf16.msra.mxu0 %v1865_v19  ;;  %1962 = vmatpush3.bf16.msra.mxu1 %v1961_v20  ;;  %v413_v19 = vld [vmem:[#allocation5 + $0x840] sm:$0xff]  ;;  %v1989_v62 = vpack.c.bf16 %v730_v58, %v729_v57 }
 0x122   :  { %1868 = vmatprep.subr.bf16.mxu0 %v1867_v22  ;;  %1964 = vmatprep.subr.bf16.mxu1 %v1963_v23  ;;  %v1901_v20 = vpack.c.bf16 %v413_v19, %v410_v18  ;;  %v736_v22 = vld [vmem:[#allocation5 + $0xaa0] sm:$0xff] }
 0x123   :  { %v1967_v23 = vpack.c.bf16 %v736_v22, %v735_v21  ;;  %v731_v1 = vld [vmem:[#allocation5 + $0xa00] sm:$0xff] }
 0x124   :  { %v732_v2 = vld [vmem:[#allocation5 + $0xa20] sm:$0xff] }
 0x125   :  { %1870 = vmatpush1.bf16.msra.mxu0 %v1869_v41  ;;  %1966 = vmatpush3.bf16.msra.mxu1 %v1965_v30  ;;  %v1971_v41 = vpack.c.bf16 %v738_v28, %v737_v27  ;;  %v722_v30 = vld [vmem:[#allocation5 + $0x8e0] sm:$0xff] }
 0x126   :  { %1872 = vmatprep.subr.bf16.mxu0 %v1871_v31  ;;  %1968 = vmatprep.subr.bf16.mxu1 %v1967_v23  ;;  %v739_v31 = vld [vmem:[#allocation5 + $0xb00] sm:$0xff]  ;;  %v1973_v33 = vpack.c.bf16 %v722_v30, %v721_v29 }
 0x127   :  { %v1975_v34 = vpack.c.bf16 %v740_v32, %v739_v31  ;;  %v750_v6 = vld [vmem:[#allocation5 + $0xc60] sm:$0xff] }
 0x128   :  { %711 = vmatmul.mubr.f32.vlgmr.msra.gmra.mrb[4].mxu1 %v222_v36  ;;  %v733_v8 = vld [vmem:[#allocation5 + $0xa40] sm:$0xff] }
 0x129   :  { %1874 = vmatpush1.bf16.msra.mxu0 %v1873_v37  ;;  %1970 = vmatpush3.bf16.msra.mxu1 %v1969_v26  ;;  %v724_v37 = vld [vmem:[#allocation5 + $0x920] sm:$0xff] }
 0x12a   :  { %1876 = vmatprep.subr.bf16.mxu0 %v1875_v43  ;;  %1972 = vmatprep.subr.bf16.mxu1 %v1971_v41  ;;  %v742_v43 = vld [vmem:[#allocation5 + $0xb60] sm:$0xff]  ;;  %v1977_v59 = vpack.c.bf16 %v724_v37, %v723_v35 }
 0x12b   :  { %v734_v9 = vld [vmem:[#allocation5 + $0xa60] sm:$0xff] }
 0x12c   :  { %v417_v15 = vld [vmem:[#allocation5 + $0x860] ss:$8 sm:$0x7] }
 0x12d   :  { %1878 = vmatpush1.bf16.msra.mxu0 %v1877_v47  ;;  %1974 = vmatpush3.bf16.msra.mxu1 %v1973_v33  ;;  %v743_v47 = vld [vmem:[#allocation5 + $0xb80] sm:$0xff]  ;;  %v422_v22 = vrot.slane %v417_v15, %v56_v40  ;;  %v426_v23 = vrot.slane %v417_v15, %v60_v42 }
 0x12e   :  { %1880 = vmatprep.subr.bf16.mxu0 %v1879_v48  ;;  %1976 = vmatprep.subr.bf16.mxu1 %v1975_v34  ;;  %v744_v48 = vld [vmem:[#allocation5 + $0xba0] sm:$0xff] }
 0x12f   :  { %v1983_v50 = vpack.c.bf16 %v744_v48, %v743_v47  ;;  %v751_v27 = vld [vmem:[#allocation5 + $0xc80] sm:$0xff] }
 0x130   :  { %v752_v28 = vld [vmem:[#allocation5 + $0xca0] sm:$0xff] }
 0x131   :  { %1882 = vmatpush1.bf16.msra.mxu0 %v1881_v53  ;;  %1978 = vmatpush3.bf16.msra.mxu1 %v1977_v59  ;;  %v745_v53 = vld [vmem:[#allocation5 + $0xbc0] sm:$0xff]  ;;  %v2000_v30 = vpack.c.bf16 %v752_v28, %v751_v27 }
 0x132   :  { %1884 = vmatprep.subr.bf16.mxu0 %v1883_v54  ;;  %v746_v54 = vld [vmem:[#allocation5 + $0xbe0] sm:$0xff] }
 0x133   :  { %v1987_v56 = vpack.c.bf16 %v746_v54, %v745_v53  ;;  %v753_v31 = vld [vmem:[#allocation5 + $0xcc0] sm:$0xff] }
 0x134   :  { %v754_v32 = vld [vmem:[#allocation5 + $0xce0] sm:$0xff] }
 0x135   :  { %1886 = vmatpush1.bf16.msra.mxu0 %v1885_v60  ;;  %v747_v60 = vld [vmem:[#allocation5 + $0xc00] sm:$0xff]  ;;  %v2003_v33 = vpack.c.bf16 %v754_v32, %v753_v31 }
 0x136   :  { %1888 = vmatprep.subr.bf16.mxu0 %v1887_v61  ;;  %v748_v61 = vld [vmem:[#allocation5 + $0xc20] sm:$0xff] }
 0x137   :  { %v1991_v63 = vpack.c.bf16 %v748_v61, %v747_v60  ;;  %v755_v39 = vld [vmem:[#allocation5 + $0xd00] sm:$0xff] }
 0x138   :  { %v756_v40 = vld [vmem:[#allocation5 + $0xd20] sm:$0xff] }
 0x139   :  { %1890 = vmatpush1.bf16.msra.mxu0 %v1889_v3  ;;  %v1993_v3 = vpack.c.bf16 %v732_v2, %v731_v1  ;;  %v2006_v42 = vpack.c.bf16 %v756_v40, %v755_v39  ;;  %v757_v34 = vld [vmem:[#allocation5 + $0xd40] sm:$0xff] }
 0x13a   :  { %1892 = vmatprep.subr.bf16.mxu0 %v1891_v4  ;;  %v749_v4 = vld [vmem:[#allocation5 + $0xc40] sm:$0xff] }
 0x13b   :  { %v1995_v7 = vpack.c.bf16 %v750_v6, %v749_v4  ;;  %v758_v35 = vld [vmem:[#allocation5 + $0xd60] sm:$0xff] }
 0x13c   :  { %v2009_v37 = vpack.c.bf16 %v758_v35, %v757_v34  ;;  %v762_v45 = vld [vmem:[#allocation5 + $0xde0] sm:$0xff] }
 0x13d   :  { %1894 = vmatpush1.bf16.msra.mxu0 %v1893_v10  ;;  %v1997_v10 = vpack.c.bf16 %v734_v9, %v733_v8  ;;  %v763_v47 = vld [vmem:[#allocation5 + $0xe00] sm:$0xff] }
 0x13e   :  { %1896 = vmatprep.subr.bf16.mxu0 %v1895_v11  ;;  %v2213_v11 = vmov 0.0|0.0   ;;  %v764_v48 = vld [vmem:[#allocation5 + $0xe20] sm:$0xff] }
 0x13f   :  { %v766_v51 = vld [vmem:[#allocation5 + $0xe60] sm:$0xff] }
 0x140   :  { %v909_v54 = vld [vmem:[#allocation5 + $0xea0] sm:$0xff] }
 0x141   :  { %1898 = vmatpush1.bf16.msra.mxu0 %v1897_v16  ;;  %v430_v16 = vrot.slane %v417_v15, %v64_v5  ;;  %v997_v58 = vld [vmem:[#allocation5 + $0x10e0] sm:$0xff] }
 0x142   :  { %1900 = vmatprep.subr.bf16.mxu0 %v1899_v17  ;;  %v911_v60 = vld [vmem:[#allocation5 + $0xee0] sm:$0xff] }
 0x143   :  { %v912_v61 = vld [vmem:[#allocation5 + $0xf00] sm:$0xff] }
 0x144   :  { %v999_v1 = vld [vmem:[#allocation5 + $0x1120] sm:$0xff]  ;;  %v2027_v2 = vpack.c.bf16 %v912_v61, %v911_v60 }
 0x145   :  { %1902 = vmatpush1.bf16.msra.mxu0 %v1901_v20  ;;  %v913_v4 = vld [vmem:[#allocation5 + $0xf20] sm:$0xff] }
 0x146   :  { %2023 = vmatprep.subr.bf16.mxu0 %v2213_v11  ;;  %v914_v6 = vld [vmem:[#allocation5 + $0xf40] sm:$0xff] }
 0x147   :  { %v1001_v8 = vld [vmem:[#allocation5 + $0x1160] sm:$0xff]  ;;  %v2030_v9 = vpack.c.bf16 %v914_v6, %v913_v4 }
 0x148   :  { %570 = vmatmul.mubr.f32.vlgmr.msra.gmra.mrb[2].mxu0 %v222_v36  ;;  %v741_v36 = vld [vmem:[#allocation5 + $0xb40] sm:$0xff] }
 0x149   :  { %v1979_v44 = vpack.c.bf16 %v742_v43, %v741_v36  ;;  %1654 = vmatprep.mubr.msk.f32.mxu0 %vm2214_vm1, %v2212_v0  ;;  %v759_v36 = vld [vmem:[#allocation5 + $0xd80] sm:$0xff] }
 0x14a   :  { %v760_v43 = vld [vmem:[#allocation5 + $0xda0] sm:$0xff] }
 0x14b   :  { %1980 = vmatprep.subr.bf16.mxu1 %v1979_v44  ;;  %v2012_v59 = vpack.c.bf16 %v760_v43, %v759_v36  ;;  %v761_v44 = vld [vmem:[#allocation5 + $0xdc0] sm:$0xff]  ;;  %v42_v36 = vld [vmem:[%s2374_s1] sm:$0xff]  ;;  %s2217_s1 = smov [#allocation7]  }
 0x14c   :  { %1982 = vmatpush3.bf16.msra.mxu1 %v1981_v49  ;;  %v2015_v46 = vpack.c.bf16 %v762_v45, %v761_v44  ;;  %v2018_v49 = vpack.c.bf16 %v764_v48, %v763_v47  ;;  %v1003_v15 = vld [vmem:[#allocation5 + $0x11a0] sm:$0xff]  ;;  %1084 = vrot.lane.b32.xlu0 %v42_v36, %s2215_s11  ;;  %s1381_s12 = sshll.u32 %s2217_s1, 4  ;;  %s1382_s12 = int_to_ptr.vmem [resolvable:$true] %s1381_s12 }
 0x14d   :  { %1984 = vmatprep.subr.bf16.mxu1 %v1983_v50  ;;  %v765_v50 = vld [vmem:[#allocation5 + $0xe40] sm:$0xff]  ;;  %s2180_s13 = scalar_lea.vmem %s1382_s12, 128  ;;  %p2185_p3 = scmp.lt.s32.totalorder %s1382_s12, %s1382_s12 }
 0x14e   :  { %v2021_v52 = vpack.c.bf16 %v766_v51, %v765_v50  ;;  %v1007_v27 = vld [vmem:[#allocation5 + $0x1220] sm:$0xff]  ;;  %p2181_p2 = scmp.ne.s32.totalorder %s1382_s12, %s2180_s13  ;;  %p2186_p4 = scmp.lt.s32.totalorder %s2180_s13, %s2180_s13 }
 0x14f   :  { %v1009_v31 = vld [vmem:[#allocation5 + $0x1260] sm:$0xff] }
 0x150   :  { %1986 = vmatpush3.bf16.msra.mxu1 %v1985_v55  ;;  %v910_v55 = vld [vmem:[#allocation5 + $0xec0] sm:$0xff]  ;;  %p2187_p5 = por %p2186_p4, %p2185_p3 }
 0x151   :  { %1988 = vmatprep.subr.bf16.mxu1 %v1987_v56  ;;  %v996_v56 = vld [vmem:[#allocation5 + $0x10c0] sm:$0xff]  ;;  %v2024_v57 = vpack.c.bf16 %v910_v55, %v909_v54 }
 0x152   :  { %v923_v39 = vld [vmem:[#allocation5 + $0x1060] sm:$0xff]  ;;  %p2188_p6 = pnand %p2187_p5, %p2181_p2 }
 0x153   :  { %2025 = vmatpush3.bf16.msra.mxu0 %v2024_v57  ;;  %v924_v40 = vld [vmem:[#allocation5 + $0x1080] sm:$0xff] }
 0x154   :  { %1990 = vmatpush3.bf16.msra.mxu1 %v1989_v62  ;;  %v2048_v62 = vpack.c.bf16 %v997_v58, %v996_v56  ;;  %2026 = vmatprep.subr.bf16.mxu0 %v2213_v11  ;;  %v2045_v34 = vpack.c.bf16 %v924_v40, %v923_v39  ;;  %v1011_v35 = vld [vmem:[#allocation5 + $0x12a0] sm:$0xff] }
 0x155   :  { %1992 = vmatprep.subr.bf16.mxu1 %v1991_v63  ;;  %v998_v63 = vld [vmem:[#allocation5 + $0x1100] sm:$0xff] }
 0x156   :  { %v767_v45 = vld [vmem:[#allocation5 + $0xe80] ss:$0 sm:$0xff]  ;;  %v1106_v51 = vld [vmem:[#allocation5 + $0x12e0] sm:$0xe] }
 0x157   :  { %2028 = vmatpush3.bf16.msra.mxu0 %v2027_v2  ;;  %v1012_v54 = vld [vmem:[#allocation5 + $0x12c0] ss:$0 sm:$0xff] }
 0x158   :  { %1994 = vmatpush3.bf16.msra.mxu1 %v1993_v3  ;;  %v2051_v3 = vpack.c.bf16 %v999_v1, %v998_v63  ;;  %2029 = vmatprep.subr.bf16.mxu0 %v2213_v11  ;;  %v925_v56 = vld [vmem:[#allocation5 + $0x10a0] ss:$0 sm:$0xff] }
 0x159   :  { %1996 = vmatprep.subr.bf16.mxu1 %v1995_v7  ;;  %v1000_v7 = vld [vmem:[#allocation5 + $0x1140] sm:$0xff] }
 0x15a   :  { %v1209_v39 = vld [vmem:[#allocation5 + $0x14e0] sm:$0xff] }
 0x15b   :  { %2031 = vmatpush3.bf16.msra.mxu0 %v2030_v9 }
 0x15c   :  { %1998 = vmatpush3.bf16.msra.mxu1 %v1997_v10  ;;  %v2054_v10 = vpack.c.bf16 %v1001_v8, %v1000_v7  ;;  %2032 = vmatprep.subr.bf16.mxu0 %v2213_v11 }
 0x15d   :  { %1999 = vmatprep.subr.bf16.mxu1 %v2213_v11 }
 0x1be   :  { %v1085_v55 = vpop.permute.xlu0 %1084 }
 0x1db   :  { %v1427_v12 = vpop.f32.mrb[2].mxu1 }
 0x1dc   :  { %v1428_v13 = vpop.f32.mrb[3].mxu1 }
 0x1dd   :  { %v1429_v14 = vadd.f32 %v1428_v13, %v1427_v12  ;;  %v915_v12 = vld [vmem:[#allocation5 + $0xf60] sm:$0xff] }
 0x1de   :  { %v916_v13 = vld [vmem:[#allocation5 + $0xf80] sm:$0xff] }
 0x1df   :  { %v643_v19 = vadd.f32 %v1429_v14, %v430_v16  ;;  %v1002_v14 = vld [vmem:[#allocation5 + $0x1180] sm:$0xff]  ;;  %v2033_v16 = vpack.c.bf16 %v916_v13, %v915_v12 }
 0x1e1   :  { %2034 = vmatpush3.bf16.msra.mxu0 %v2033_v16  ;;  %v1195_v16 = vld [vmem:[#allocation5 + $0x1320] sm:$0xff] }
 0x1e2   :  { %2035 = vmatprep.subr.bf16.mxu0 %v2213_v11 }
 0x1fb   :  { %v1462_v17 = vpop.f32.mrb[4].mxu1 }
 0x1fc   :  { %v1463_v18 = vpop.f32.mrb[5].mxu1 }
 0x1fd   :  { %v1464_v20 = vadd.f32 %v1463_v18, %v1462_v17  ;;  %v2057_v17 = vpack.c.bf16 %v1003_v15, %v1002_v14  ;;  %v917_v18 = vld [vmem:[#allocation5 + $0xfa0] sm:$0xff] }
 0x1fe   :  { %v1194_v15 = vld [vmem:[#allocation5 + $0x1300] sm:$0xff] }
 0x1ff   :  { %v713_v21 = vadd.f32 %v1464_v20, %v643_v19  ;;  %v918_v19 = vld [vmem:[#allocation5 + $0xfc0] sm:$0xff] }
 0x200   :  { %v1004_v20 = vld [vmem:[#allocation5 + $0x11c0] sm:$0xff] }
 0x201   :  { %v718_v53 = vmax.f32 %v713_v21, 0.0  ;;  %v1005_v21 = vld [vmem:[#allocation5 + $0x11e0] sm:$0xff] }
 0x21b   :  { %v571_v24 = vpop.f32.mrb[2].mxu0 }
 0x21c   :  { %v2119_v25 = vadd.f32 %v571_v24, %v422_v22  ;;  %v573_v26 = vpop.f32.mrb[3].mxu0  ;;  %v2036_v22 = vpack.c.bf16 %v918_v19, %v917_v18  ;;  %v919_v24 = vld [vmem:[#allocation5 + $0xfe0] sm:$0xff]  ;;  %v2072_v18 = vpack.c.bf16 %v1195_v16, %v1194_v15 }
 0x21d   :  { %v2120_v29 = vadd.f32 %v573_v26, %v426_v23  ;;  %v2060_v23 = vpack.c.bf16 %v1005_v21, %v1004_v20  ;;  %v1006_v26 = vld [vmem:[#allocation5 + $0x1200] sm:$0xff] }
 0x21e   :  { %v716_v5 = vmax.f32 %v2119_v25, 0.0  ;;  %v920_v25 = vld [vmem:[#allocation5 + $0x1000] sm:$0xff]  ;;  %2037 = vmatpush3.bf16.msra.mxu0 %v2036_v22 }
 0x21f   :  { %v717_v41 = vmax.f32 %v2120_v29, 0.0  ;;  %v2039_v28 = vpack.c.bf16 %v920_v25, %v919_v24  ;;  %2038 = vmatprep.subr.bf16.mxu0 %v2213_v11  ;;  %v2063_v29 = vpack.c.bf16 %v1007_v27, %v1006_v26  ;;  %v1197_v19 = vld [vmem:[#allocation5 + $0x1360] sm:$0xff] }
 0x220   :  { %v1198_v21 = vld [vmem:[#allocation5 + $0x1380] sm:$0xff] }
 0x221   :  { %832 = vmatprep.mubr.f32.mxu1 %v717_v41  ;;  %v921_v41 = vld [vmem:[#allocation5 + $0x1020] sm:$0xff] }
 0x222   :  { %833 = vmatmul.mubr.f32.vlgmr.msra.gmra.mrb[6].mxu1 %v716_v5  ;;  %v1008_v5 = vld [vmem:[#allocation5 + $0x1240] sm:$0xff]  ;;  %2040 = vmatpush3.bf16.msra.mxu0 %v2039_v28 }
 0x223   :  { %2001 = vmatpush3.bf16.msra.mxu1 %v2000_v30  ;;  %1619 = vmatprep.mubr.msk.f32.mxu1 %vm2214_vm1, %v2212_v0  ;;  %v922_v30 = vld [vmem:[#allocation5 + $0x1040] sm:$0xff] }
 0x224   :  { %2002 = vmatprep.subr.bf16.mxu1 %v2213_v11  ;;  %v2042_v32 = vpack.c.bf16 %v922_v30, %v921_v41  ;;  %2041 = vmatprep.subr.bf16.mxu0 %v2213_v11  ;;  %v1201_v24 = vld [vmem:[#allocation5 + $0x13e0] sm:$0xff] }
 0x225   :  { %v1202_v26 = vld [vmem:[#allocation5 + $0x1400] sm:$0xff] }
 0x226   :  { %2043 = vmatpush3.bf16.msra.mxu0 %v2042_v32  ;;  %v1203_v27 = vld [vmem:[#allocation5 + $0x1420] sm:$0xff] }
 0x227   :  { %2004 = vmatpush3.bf16.msra.mxu1 %v2003_v33  ;;  %v2066_v33 = vpack.c.bf16 %v1009_v31, %v1008_v5  ;;  %2044 = vmatprep.subr.bf16.mxu0 %v2213_v11  ;;  %v2084_v28 = vpack.c.bf16 %v1203_v27, %v1202_v26  ;;  %v1205_v41 = vld [vmem:[#allocation5 + $0x1460] sm:$0xff] }
 0x228   :  { %2005 = vmatprep.subr.bf16.mxu1 %v2213_v11  ;;  %v1206_v5 = vld [vmem:[#allocation5 + $0x1480] sm:$0xff] }
 0x229   :  { %v1207_v31 = vld [vmem:[#allocation5 + $0x14a0] sm:$0xff] }
 0x22a   :  { %2046 = vmatpush3.bf16.msra.mxu0 %v2045_v34  ;;  %v2090_v32 = vpack.c.bf16 %v1207_v31, %v1206_v5  ;;  %v1283_v34 = vld [vmem:[#allocation5 + $0x1540] sm:$0xff] }
 0x22b   :  { %2007 = vmatpush3.bf16.msra.mxu1 %v2006_v42  ;;  %v1010_v42 = vld [vmem:[#allocation5 + $0x1280] sm:$0xff]  ;;  %1692 = vmatprep.subr.mxu0 %v2212_v0 }
 0x22c   :  { %2008 = vmatprep.subr.bf16.mxu1 %v2213_v11 }
 0x22f   :  { %2010 = vmatpush3.bf16.msra.mxu1 %v2009_v37  ;;  %v2069_v37 = vpack.c.bf16 %v1011_v35, %v1010_v42  ;;  %v1282_v42 = vld [vmem:[#allocation5 + $0x1520] sm:$0xff] }
 0x230   :  { %2011 = vmatprep.subr.bf16.mxu1 %v2213_v11  ;;  %v1284_v35 = vld [vmem:[#allocation5 + $0x1560] sm:$0xff] }
 0x233   :  { %2013 = vmatpush3.bf16.msra.mxu1 %v2012_v59 }
 0x234   :  { %2014 = vmatprep.subr.bf16.mxu1 %v2213_v11 }
 0x237   :  { %2016 = vmatpush3.bf16.msra.mxu1 %v2015_v46 }
 0x238   :  { %2017 = vmatprep.subr.bf16.mxu1 %v2213_v11 }
 0x23b   :  { %2019 = vmatpush3.bf16.msra.mxu1 %v2018_v49 }
 0x23c   :  { %2020 = vmatprep.subr.bf16.mxu1 %v2213_v11 }
 0x23f   :  { %2022 = vmatpush3.bf16.msra.mxu1 %v2021_v52  ;;  %v1114_v52 = vrot.slane %v1106_v51, 1 }
 0x240   :  { %2047 = vmatprep.subr.bf16.mxu1 %v2213_v11 }
 0x242   :  { %1620 = vmatmul.mubr.f32.vlgmr.msra.gmra.mrb[8].mxu1 %v718_v53  ;;  %v2216_v53 = vmov 0  }
 0x243   :  { %1689 = vmatprep.mubr.msk.f32.mxu1 %vm2214_vm1, %v2212_v0  ;;  %2049 = vmatpush3.bf16.msra.mxu1 %v2048_v62 }
 0x244   :  { %2050 = vmatprep.subr.bf16.mxu1 %v2213_v11  ;;  %2133 = vset.pattern.permute.xlu0 %v2216_v53  ;;  %v1293_v53 = vld [vmem:[#allocation5 + $0x1680] sm:$0xff] }
 0x245   :  { %1109 = vperm.xlu0 %2133, %v42_v36   ;;  %v1285_v36 = vld [vmem:[#allocation5 + $0x1580] sm:$0xff] }
 0x247   :  { %2052 = vmatpush3.bf16.msra.mxu1 %v2051_v3 }
 0x248   :  { %2053 = vmatprep.subr.bf16.mxu1 %v2213_v11 }
 0x24b   :  { %2055 = vmatpush3.bf16.msra.mxu1 %v2054_v10 }
 0x24c   :  { %2056 = vmatprep.subr.bf16.mxu1 %v2213_v11 }
 0x24f   :  { %2058 = vmatpush3.bf16.msra.mxu1 %v2057_v17  ;;  %v1196_v17 = vld [vmem:[#allocation5 + $0x1340] sm:$0xff] }
 0x250   :  { %2059 = vmatprep.subr.bf16.mxu1 %v2213_v11  ;;  %v2075_v20 = vpack.c.bf16 %v1197_v19, %v1196_v17  ;;  %v1298_v17 = vld [vmem:[#allocation5 + $0x1720] ss:$0 sm:$0xff] }
 0x253   :  { %2061 = vmatpush3.bf16.msra.mxu1 %v2060_v23  ;;  %v1200_v23 = vld [vmem:[#allocation5 + $0x13c0] sm:$0xff] }
 0x254   :  { %2062 = vmatprep.subr.bf16.mxu1 %v2213_v11  ;;  %v2081_v25 = vpack.c.bf16 %v1201_v24, %v1200_v23 }
 0x257   :  { %2064 = vmatpush3.bf16.msra.mxu1 %v2063_v29  ;;  %v1204_v29 = vld [vmem:[#allocation5 + $0x1440] sm:$0xff] }
 0x258   :  { %2065 = vmatprep.subr.bf16.mxu1 %v2213_v11  ;;  %v2087_v30 = vpack.c.bf16 %v1205_v41, %v1204_v29 }
 0x25b   :  { %2067 = vmatpush3.bf16.msra.mxu1 %v2066_v33  ;;  %v1208_v33 = vld [vmem:[#allocation5 + $0x14c0] sm:$0xff] }
 0x25c   :  { %2068 = vmatprep.subr.bf16.mxu1 %v2213_v11  ;;  %v2093_v40 = vpack.c.bf16 %v1209_v39, %v1208_v33 }
 0x25f   :  { %2070 = vmatpush3.bf16.msra.mxu1 %v2069_v37  ;;  %v2096_v37 = vpack.c.bf16 %v1283_v34, %v1282_v42 }
 0x260   :  { %2071 = vmatprep.subr.bf16.mxu1 %v2213_v11 }
 0x2f5   :  { %v1497_v43 = vpop.f32.mrb[6].mxu1 }
 0x2f6   :  { %v1498_v59 = vpop.f32.mrb[7].mxu1 }
 0x2f7   :  { %v1499_v44 = vadd.f32 %v1498_v59, %v1497_v43  ;;  %v2099_v43 = vpack.c.bf16 %v1285_v36, %v1284_v35  ;;  %v1286_v59 = vld [vmem:[#allocation5 + $0x15a0] sm:$0xff] }
 0x2f9   :  { %v835_v46 = vadd.f32 %v1499_v44, %v767_v45  ;;  %v1287_v44 = vld [vmem:[#allocation5 + $0x15c0] sm:$0xff] }
 0x2fa   :  { %v2102_v45 = vpack.c.bf16 %v1287_v44, %v1286_v59 }
 0x315   :  { %v904_v47 = vpop.f32.mrb[8].mxu1 }
 0x316   :  { %v905_v48 = vadd.f32 %v904_v47, %v835_v46  ;;  %v1621_v49 = vpop.f32.mrb[9].mxu1  ;;  %v1288_v46 = vld [vmem:[#allocation5 + $0x15e0] sm:$0xff] }
 0x317   :  { %v1289_v47 = vld [vmem:[#allocation5 + $0x1600] sm:$0xff] }
 0x318   :  { %v908_v50 = vmax.f32 %v905_v48, 0.0  ;;  %v2105_v48 = vpack.c.bf16 %v1289_v47, %v1288_v46  ;;  %v1290_v49 = vld [vmem:[#allocation5 + $0x1620] sm:$0xff] }
 0x31a   :  { %1655 = vmatmul.mubr.f32.vlgmr.msra.gmra.mrb[4].mxu0 %v908_v50  ;;  %1690 = vmatmul.mubr.f32.vlgmr.msra.gmra.mrb[10].mxu1 %v908_v50  ;;  %v1291_v50 = vld [vmem:[#allocation5 + $0x1640] sm:$0xff] }
 0x31b   :  { %1694 = vmatprep.mubr.msk.f32.mxu0 %vm2214_vm1, %v2212_v0  ;;  %1729 = vmatprep.mubr.msk.f32.mxu1 %vm2214_vm1, %v2212_v0  ;;  %v2108_v51 = vpack.c.bf16 %v1291_v50, %v1290_v49 }
 0x31c   :  { %1693 = vmatpush3.msk.msra.mxu0 %vm1118_vm2, %v1114_v52  ;;  %2073 = vmatpush3.bf16.msra.mxu1 %v2072_v18  ;;  %v1292_v52 = vld [vmem:[#allocation5 + $0x1660] sm:$0xff] }
 0x31d   :  { %2095 = vmatprep.subr.bf16.mxu0 %v2213_v11  ;;  %2074 = vmatprep.subr.bf16.mxu1 %v2213_v11 }
 0x320   :  { %2076 = vmatpush3.bf16.msra.mxu1 %v2075_v20 }
 0x321   :  { %2077 = vmatprep.subr.bf16.mxu1 %v2213_v11 }
 0x3ed   :  { %v992_v57 = vpop.f32.mrb[4].mxu0  ;;  %v1079_v58 = vpop.f32.mrb[10].mxu1 }
 0x3ee   :  { %v1080_v60 = vadd.f32 %v1079_v58, %v1012_v54  ;;  %v1656_v61 = vpop.f32.mrb[5].mxu0  ;;  %v1691_v62 = vpop.f32.mrb[11].mxu1  ;;  %v993_v63 = vadd.f32 %v992_v57, %v925_v56  ;;  %v2111_v54 = vpack.c.bf16 %v1293_v53, %v1292_v52  ;;  %v1295_v56 = vld [vmem:[#allocation5 + $0x16c0] sm:$0xff] }
 0x3ef   :  { %v1105_v58 = vld [vmem:[#allocation5 + $0x12e0] ss:$0 sm:$0xff]  ;;  %v1107_v62 = vld [vmem:[#allocation5 + $0x12e4] ss:$0 sm:$0xff] }
 0x3f0   :  { %v1092_v1 = vmul.f32 2.0, %v1080_v60  ;;  %v1087_v2 = vmul.f32 %v1085_v55, %v1080_v60  ;;  %v1089_v6 = vmul.f32 %v993_v63, %v993_v63  ;;  %v1294_v55 = vld [vmem:[#allocation5 + $0x16a0] sm:$0xff]  ;;  %v1110_v60 = vpop.permute.xlu0 %1109 }
 0x3f1   :  { %v2114_v57 = vpack.c.bf16 %v1295_v56, %v1294_v55  ;;  %v1112_v61 = vmul.f32 %v1110_v60, %v1105_v58 }
 0x3f2   :  { %v1093_v3 = vmul.f32 1.442695, %v1092_v1  ;;  %v1088_v4 = vadd.f32 %v1087_v2, %v993_v63  ;;  %v1091_v8 = vmul.f32 99.99999, %v1089_v6  ;;  %v1296_v6 = vld [vmem:[#allocation5 + $0x16e0] sm:$0xff] }
 0x3f4   :  { %2134 = vpow2.f32 %v1093_v3  ;;  %1695 = vmatmul.mubr.msk.f32.vlgmr.msra.gmra.mrb[6].mxu0 %vm1099_vm3, %v1088_v4 }
 0x3f5   :  { %1764 = vmatprep.mubr.msk.f32.mxu0 %vm2214_vm1, %v2212_v0  ;;  %v1199_v0 = vld [vmem:[#allocation5 + $0x13a0] sm:$0xff]  ;;  %2097 = vmatpush3.bf16.msra.mxu0 %v2096_v37 }
 0x3f6   :  { %v2078_v22 = vpack.c.bf16 %v1199_v0, %v1198_v21  ;;  %2098 = vmatprep.subr.bf16.mxu0 %v2213_v11 }
 0x3f8   :  { %2079 = vmatpush3.bf16.msra.mxu1 %v2078_v22 }
 0x3f9   :  { %2080 = vmatprep.subr.bf16.mxu1 %v2213_v11  ;;  %2100 = vmatpush3.bf16.msra.mxu0 %v2099_v43 }
 0x3fa   :  { %2101 = vmatprep.subr.bf16.mxu0 %v2213_v11 }
 0x3fc   :  { %2082 = vmatpush3.bf16.msra.mxu1 %v2081_v25 }
 0x3fd   :  { %2083 = vmatprep.subr.bf16.mxu1 %v2213_v11  ;;  %2103 = vmatpush3.bf16.msra.mxu0 %v2102_v45 }
 0x3fe   :  { %v2135_v7 = vpop.eup %2134  ;;  %2104 = vmatprep.subr.bf16.mxu0 %v2213_v11 }
 0x3ff   :  { %v1095_v9 = vmul.f32 99.99999, %v2135_v7  ;;  %v1297_v7 = vld [vmem:[#allocation5 + $0x1700] sm:$0xff] }
 0x400   :  { %2085 = vmatpush3.bf16.msra.mxu1 %v2084_v28 }
 0x401   :  { %v1096_v10 = vadd.f32 %v1095_v9, %v1091_v8  ;;  %2086 = vmatprep.subr.bf16.mxu1 %v2213_v11  ;;  %2106 = vmatpush3.bf16.msra.mxu0 %v2105_v48  ;;  %v2117_v8 = vpack.c.bf16 %v1297_v7, %v1296_v6  ;;  %v1210_v9 = vld [vmem:[#allocation5 + $0x1500] ss:$0 sm:$0xff] }
 0x402   :  { %2107 = vmatprep.subr.bf16.mxu0 %v2213_v11 }
 0x403   :  { %v1097_v12 = vsub.f32 %v1096_v10, %v1092_v1 }
 0x404   :  { %2088 = vmatpush3.bf16.msra.mxu1 %v2087_v30 }
 0x405   :  { %v1098_v13 = vadd.f32 -4.6051702, %v1097_v12  ;;  %2089 = vmatprep.subr.bf16.mxu1 %v2213_v11  ;;  %2109 = vmatpush3.bf16.msra.mxu0 %v2108_v51 }
 0x406   :  { %2110 = vmatprep.subr.bf16.mxu0 %v2213_v11 }
 0x407   :  { %v1100_v14 = vsel %vm1099_vm3, %v1098_v13, 0.0 }
 0x408   :  { %1101 = vadd.xlane.f32.xlu1 %v1100_v14  ;;  %2091 = vmatpush3.bf16.msra.mxu1 %v2090_v32 }
 0x409   :  { %2092 = vmatprep.subr.bf16.mxu1 %v2213_v11  ;;  %2112 = vmatpush3.bf16.msra.mxu0 %v2111_v54 }
 0x40a   :  { %2113 = vmatprep.subr.bf16.mxu0 %v2213_v11 }
 0x40c   :  { %2094 = vmatpush3.bf16.msra.mxu1 %v2093_v40 }
 0x40d   :  { %2115 = vmatpush3.bf16.msra.mxu0 %v2114_v57 }
 0x40e   :  { %2116 = vmatprep.subr.bf16.mxu0 %v2213_v11  ;;  %v1370_v11 = vand.u32 127, %v54_v38 }
 0x410   :  { %vm1371_vm4 = vcmp.eq.s32.totalorder %v1370_v11, 1 }
 0x411   :  { %2118 = vmatpush3.bf16.msra.mxu0 %v2117_v8 }
 0x495   :  { %v1102_v15 = vpop.xlane.xlu1 %1101 }
 0x496   :  { %v1104_v16 = vmul.f32 0.33333334, %v1102_v15 }
 0x498   :  { %v1372_v21 = vsel %vm1371_vm4, %v1104_v16, 0.0 }
 0x4c7   :  { %v1187_v63 = vpop.f32.mrb[6].mxu0 }
 0x4c8   :  { %v1191_v1 = vadd.f32 %v1187_v63, %v1112_v61  ;;  %v1696_v2 = vpop.f32.mrb[7].mxu0 }
 0x4ca   :  { %v1192_v3 = vadd.f32 %v1191_v1, %v1107_v62 }
 0x4cc   :  { %v1193_v4 = vmax.f32 %v1192_v3, 0.0 }
 0x4ce   :  { %1730 = vmatmul.mubr.f32.vlgmr.msra.gmra.mrb[12].mxu1 %v1193_v4 }
 0x5a1   :  { %v1277_v10 = vpop.f32.mrb[12].mxu1 }
 0x5a2   :  { %v1278_v12 = vadd.f32 %v1277_v10, %v1210_v9  ;;  %v1731_v13 = vpop.f32.mrb[13].mxu1 }
 0x5a4   :  { %v1281_v14 = vmax.f32 %v1278_v12, 0.0 }
 0x5a6   :  { %1765 = vmatmul.mubr.f32.vlgmr.msra.gmra.mrb[8].mxu0 %v1281_v14 }
 0x679   :  { %v1365_v18 = vpop.f32.mrb[8].mxu0 }
 0x67a   :  { %v1366_v19 = vadd.f32 %v1365_v18, %v1298_v17  ;;  %v1766_v20 = vpop.f32.mrb[9].mxu0 }
 0x67c   :  { %v1373_v0 = vadd.f32 %v1372_v21, %v1366_v19 }
 0x67e   :  { %1374 = vst [vmem:[#allocation7] sm:$0xff] %v1373_v0 }
 0x67f   :  { %2191 = shalt.err (!%p2188_p6)
}
 0x680   :  { %s2192_s16 = scalar_lea.hbm %s2376_s3, 128 }
 0x681   :  { %p2193_p7 = scmp.ne.s32.totalorder %s2376_s3, %s2192_s16  ;;  %p2196_p8 = scmp.lt.u32.totalorder %s2192_s16, %s2376_s3 }
 0x683   :  { %p2198_p9 = pnand %p2196_p8, %p2193_p7 }
 0x685   :  { %2201 = shalt.err (!%p2198_p9)
}
 0x686   :  { %1384 = dma.vmem_to_hbm [thread:$0]  %s1382_s12, 128, %s2376_s3, [#allocation4]  }
 0x687   :  { %2206 = dma.done.wait [#allocation4], 128  }
 0x688   :  { %2207 = vsyncadd [#allocation4], 4294967168 }
 0x689   :  { %1388 = vsyncpa [#allocation3], 1 }
 0x68a   :  { %1389 = vsyncpa [#allocation6], 1 }
 0x68b   :  { %1390 = vsyncpa [#allocation4], 1 }

</bundles_post_ra>
